<compile_context>
chip_gen: v7x
topology: tpu7x:2x2x1
jax: 0.10.0
libtpu: 0.0.40
codegen_flags: <defaults>
</compile_context>

<pallas_src>
import functools

import jax
import jax.numpy as jnp
from jax.experimental import pallas as pl
from jax.experimental.pallas import tpu as pltpu


def _ltm_disc_kernel(xt_ref, w1_ref, b1_ref, w2_ref, b2_ref, w3_ref, b3_ref,
                     o_ref):
    """Fused 3-layer MLP discriminator, transposed layout (batch on lanes)."""
    # Layer 1: (512, insz) @ (insz, block_b) -> (512, block_b), f32 accumulate.
    h1 = jnp.dot(w1_ref[...], xt_ref[...], preferred_element_type=jnp.float32)
    h1 = h1 + b1_ref[...]                      # (512, 1) broadcast over lanes
    h1 = jnp.where(h1 > 0, h1, 0.2 * h1)       # LeakyReLU(0.2) on VPU (f32)

    # Layer 2: (256, 512) @ (512, block_b) -> (256, block_b), f32 accumulate.
    h2 = jnp.dot(w2_ref[...], h1.astype(jnp.bfloat16),
                 preferred_element_type=jnp.float32)
    h2 = h2 + b2_ref[...]                      # (256, 1) broadcast over lanes
    h2 = jnp.where(h2 > 0, h2, 0.2 * h2)

    # Layer 3: (256 -> 1) as VPU multiply + XLU sublane reduce (skip N=1 MXU).
    logit = jnp.sum(h2 * w3_ref[...], axis=0, keepdims=True)   # (1, block_b)
    logit = logit + b3_ref[...]

    # Sigmoid: exp on EUP, approximate reciprocal on EUP (vrcp).
    prob = pl.reciprocal(1.0 + jnp.exp(-logit), approx=True)

    o_ref[...] = prob.astype(o_ref.dtype)      # lane-dense (1, block_b) store


@functools.partial(jax.jit, static_argnames=("block_b",))
def ltm_discriminator(x, w1, b1, w2, b2, w3, b3, *, block_b=256):
    """Runs the fused discriminator MLP.

    x : (B, inputsize) float32
    Weights in PyTorch nn.Linear layout:
      w1: (512, inputsize)  b1: (512,)
      w2: (256, 512)        b2: (256,)
      w3: (1, 256)          b3: (1,)
    Returns (B, 1) float32 in (0, 1).
    """
    B, insz = x.shape
    h1_dim, h2_dim = w1.shape[0], w2.shape[0]

    # Pad batch to a multiple of block_b (no assertion failures), then
    # transpose so the batch sits on the lane axis inside the kernel.
    b_pad = ((B + block_b - 1) // block_b) * block_b
    if b_pad != B:
        x = jnp.pad(x, ((0, b_pad - B), (0, 0)))
    xt = x.T.astype(jnp.bfloat16)                       # (insz, b_pad)

    # MXU operands in bf16 (f32 accumulation in-kernel); bias/w3 stay f32.
    w1b = w1.astype(jnp.bfloat16)                       # (512, insz)
    w2b = w2.astype(jnp.bfloat16)                       # (256, 512)
    b1c = b1.reshape(h1_dim, 1).astype(jnp.float32)     # (512, 1)
    b2c = b2.reshape(h2_dim, 1).astype(jnp.float32)     # (256, 1)
    w3c = w3.reshape(h2_dim, 1).astype(jnp.float32)     # (256, 1) column
    b3c = b3.reshape(1, 1).astype(jnp.float32)          # (1, 1)

    grid = (b_pad // block_b,)
    full = lambda i: (0, 0)

    # Advisory cost estimate for XLA scheduling around the custom call.
    flops = 2 * b_pad * (insz * h1_dim + h1_dim * h2_dim + h2_dim)
    bytes_accessed = (b_pad * insz * 2 + insz * h1_dim * 2 + h1_dim * h2_dim * 2
                      + (h1_dim + h2_dim + h2_dim + 1) * 4 + b_pad * 4)
    cost = pl.CostEstimate(flops=flops, transcendentals=2 * b_pad,
                           bytes_accessed=bytes_accessed)

    # VMEM budget: double-buffered inputs/outputs + intermediates + headroom,
    # clamped to [32 MiB, 64 MiB] (64 MiB = v7x physical VMEM per core).
    weight_bytes = insz * h1_dim * 2 + h1_dim * h2_dim * 2 \
        + (h1_dim + h2_dim + h2_dim + 1) * 4
    io_bytes = 2 * (insz * block_b * 2) + 2 * (block_b * 4)
    interm_bytes = (h1_dim + h2_dim + 8) * block_b * 4
    vmem_est = 2 * weight_bytes + io_bytes + interm_bytes + (4 << 20)
    vmem_limit = int(min(max(vmem_est, 32 << 20), 64 << 20))

    out = pl.pallas_call(
        _ltm_disc_kernel,
        out_shape=jax.ShapeDtypeStruct((1, b_pad), jnp.float32),
        grid_spec=pltpu.PrefetchScalarGridSpec(
            num_scalar_prefetch=0,
            grid=grid,
            in_specs=[
                pl.BlockSpec((insz, block_b), lambda i: (0, i)),   # x^T tile
                pl.BlockSpec(w1b.shape, full),                     # W1
                pl.BlockSpec(b1c.shape, full),                     # b1 column
                pl.BlockSpec(w2b.shape, full),                     # W2
                pl.BlockSpec(b2c.shape, full),                     # b2 column
                pl.BlockSpec(w3c.shape, full),                     # w3 column
                pl.BlockSpec(b3c.shape, full),                     # b3
            ],
            out_specs=pl.BlockSpec((1, block_b), lambda i: (0, i)),
        ),
        compiler_params=pltpu.CompilerParams(
            dimension_semantics=("parallel",),
            vmem_limit_bytes=vmem_limit),
        cost_estimate=cost,
    )(xt, w1b, b1c, w2b, b2c, w3c, b3c)

    return out[0, :B].reshape(B, 1)


def init_params(key, inputsize):
    """Deterministic synthetic init, PyTorch nn.Linear layout (out, in)."""
    k1, k2, k3, k4, k5, k6 = jax.random.split(key, 6)
    s1 = 1.0 / jnp.sqrt(inputsize)
    s2 = 1.0 / jnp.sqrt(512.0)
    s3 = 1.0 / jnp.sqrt(256.0)
    w1 = jax.random.uniform(k1, (512, inputsize), jnp.float32, -s1, s1)
    b1 = jax.random.uniform(k2, (512,), jnp.float32, -s1, s1)
    w2 = jax.random.uniform(k3, (256, 512), jnp.float32, -s2, s2)
    b2 = jax.random.uniform(k4, (256,), jnp.float32, -s2, s2)
    w3 = jax.random.uniform(k5, (1, 256), jnp.float32, -s3, s3)
    b3 = jax.random.uniform(k6, (1,), jnp.float32, -s3, s3)
    return w1, b1, w2, b2, w3, b3


def reference(x, w1, b1, w2, b2, w3, b3):
    """Pure-JAX f32 reference matching the PyTorch module."""
    h1 = x @ w1.T + b1
    h1 = jnp.where(h1 > 0, h1, 0.2 * h1)
    h2 = h1 @ w2.T + b2
    h2 = jnp.where(h2 > 0, h2, 0.2 * h2)
    return jax.nn.sigmoid(h2 @ w3.T + b3)


if __name__ == "__main__":
    key = jax.random.PRNGKey(0)
    kx, kp = jax.random.split(key)

    batch = 8
    inputsize = 32

    x = jax.random.normal(kx, (batch, inputsize), dtype=jnp.float32)
    params = init_params(kp, inputsize)

    out = ltm_discriminator(x, *params)
    out = jax.block_until_ready(out)

    ref = reference(x, *params)
    assert out.shape == (batch, 1)
    # bf16 matmul operands + approx reciprocal -> compare against f32 reference
    # with a tolerance comfortably above the expected few-1e-3 error.
    assert jnp.allclose(out, ref, atol=2e-2, rtol=0.0), \
        f"max abs err {jnp.max(jnp.abs(out - ref))}"

    print("KERNEL_OK")
</pallas_src>

<mosaic_0001>
module attributes {stable_mosaic.version = 11 : i64} {
  func.func @_ltm_disc_kernel(%arg0: i32, %arg1: memref<32x256xbf16, #tpu.memory_space<vmem>>, %arg2: memref<512x32xbf16, #tpu.memory_space<vmem>>, %arg3: memref<512x1xf32, #tpu.memory_space<vmem>>, %arg4: memref<256x512xbf16, #tpu.memory_space<vmem>>, %arg5: memref<256x1xf32, #tpu.memory_space<vmem>>, %arg6: memref<256x1xf32, #tpu.memory_space<vmem>>, %arg7: memref<1x1xf32, #tpu.memory_space<vmem>>, %arg8: memref<1x256xf32, #tpu.memory_space<vmem>>) attributes {dimension_semantics = [#tpu.dimension_semantics<parallel>], iteration_bounds = array<i64: 1>, scalar_prefetch = 0 : i64, scratch_operands = 0 : i64, tpu.core_type = #tpu.core_type<tc>, window_params = [{transform_indices = @transform_0, window_bounds = array<i64: 32, 256>}, {pipeline_mode = #tpu.pipeline_mode<synchronous>, transform_indices = @transform_1, window_bounds = array<i64: 512, 32>}, {pipeline_mode = #tpu.pipeline_mode<synchronous>, transform_indices = @transform_2, window_bounds = array<i64: 512, 1>}, {pipeline_mode = #tpu.pipeline_mode<synchronous>, transform_indices = @transform_3, window_bounds = array<i64: 256, 512>}, {pipeline_mode = #tpu.pipeline_mode<synchronous>, transform_indices = @transform_4, window_bounds = array<i64: 256, 1>}, {pipeline_mode = #tpu.pipeline_mode<synchronous>, transform_indices = @transform_5, window_bounds = array<i64: 256, 1>}, {pipeline_mode = #tpu.pipeline_mode<synchronous>, transform_indices = @transform_6, window_bounds = array<i64: 1, 1>}, {transform_indices = @transform_7, window_bounds = array<i64: 1, 256>}]} {
    %c0 = arith.constant 0 : index
    %c0_0 = arith.constant 0 : index
    %0 = vector.load %arg2[%c0, %c0_0] : memref<512x32xbf16, #tpu.memory_space<vmem>>, vector<512x32xbf16>
    %c0_1 = arith.constant 0 : index
    %c0_2 = arith.constant 0 : index
    %1 = vector.load %arg1[%c0_1, %c0_2] : memref<32x256xbf16, #tpu.memory_space<vmem>>, vector<32x256xbf16>
    %cst = arith.constant dense<0.000000e+00> : vector<512x256xf32>
    %2 = tpu.matmul %0, %1, %cst {dimension_numbers = #tpu.dot_dimension_numbers<[1], [0], [0], [1], [0, 0, 1, 1], [], []>} : vector<512x32xbf16>, vector<32x256xbf16>, vector<512x256xf32> -> vector<512x256xf32>
    %c0_3 = arith.constant 0 : index
    %c0_4 = arith.constant 0 : index
    %3 = vector.load %arg3[%c0_3, %c0_4] : memref<512x1xf32, #tpu.memory_space<vmem>>, vector<512x1xf32>
    %4 = vector.broadcast %3 : vector<512x1xf32> to vector<512x256xf32>
    %5 = arith.addf %2, %4 : vector<512x256xf32>
    %cst_5 = arith.constant 0.000000e+00 : f32
    %6 = vector.broadcast %cst_5 : f32 to vector<512x256xf32>
    %7 = arith.cmpf ogt, %5, %6 : vector<512x256xf32>
    %cst_6 = arith.constant 2.000000e-01 : f32
    %8 = vector.broadcast %cst_6 : f32 to vector<512x256xf32>
    %9 = arith.mulf %8, %5 : vector<512x256xf32>
    %10 = arith.select %7, %5, %9 : vector<512x256xi1>, vector<512x256xf32>
    %c0_7 = arith.constant 0 : index
    %c0_8 = arith.constant 0 : index
    %11 = vector.load %arg4[%c0_7, %c0_8] : memref<256x512xbf16, #tpu.memory_space<vmem>>, vector<256x512xbf16>
    %12 = arith.truncf %10 : vector<512x256xf32> to vector<512x256xbf16>
    %cst_9 = arith.constant dense<0.000000e+00> : vector<256x256xf32>
    %13 = tpu.matmul %11, %12, %cst_9 {dimension_numbers = #tpu.dot_dimension_numbers<[1], [0], [0], [1], [0, 0, 1, 1], [], []>} : vector<256x512xbf16>, vector<512x256xbf16>, vector<256x256xf32> -> vector<256x256xf32>
    %c0_10 = arith.constant 0 : index
    %c0_11 = arith.constant 0 : index
    %14 = vector.load %arg5[%c0_10, %c0_11] : memref<256x1xf32, #tpu.memory_space<vmem>>, vector<256x1xf32>
    %15 = vector.broadcast %14 : vector<256x1xf32> to vector<256x256xf32>
    %16 = arith.addf %13, %15 : vector<256x256xf32>
    %cst_12 = arith.constant 0.000000e+00 : f32
    %17 = vector.broadcast %cst_12 : f32 to vector<256x256xf32>
    %18 = arith.cmpf ogt, %16, %17 : vector<256x256xf32>
    %cst_13 = arith.constant 2.000000e-01 : f32
    %19 = vector.broadcast %cst_13 : f32 to vector<256x256xf32>
    %20 = arith.mulf %19, %16 : vector<256x256xf32>
    %21 = arith.select %18, %16, %20 : vector<256x256xi1>, vector<256x256xf32>
    %c0_14 = arith.constant 0 : index
    %c0_15 = arith.constant 0 : index
    %22 = vector.load %arg6[%c0_14, %c0_15] : memref<256x1xf32, #tpu.memory_space<vmem>>, vector<256x1xf32>
    %23 = vector.broadcast %22 : vector<256x1xf32> to vector<256x256xf32>
    %24 = arith.mulf %21, %23 : vector<256x256xf32>
    %cst_16 = arith.constant dense<0.000000e+00> : vector<256xf32>
    %25 = vector.multi_reduction <add>, %24, %cst_16 [0] : vector<256x256xf32> to vector<256xf32>
    %26 = vector.shape_cast %25 : vector<256xf32> to vector<1x256xf32>
    %c0_17 = arith.constant 0 : index
    %c0_18 = arith.constant 0 : index
    %27 = vector.load %arg7[%c0_17, %c0_18] : memref<1x1xf32, #tpu.memory_space<vmem>>, vector<1x1xf32>
    %28 = vector.broadcast %27 : vector<1x1xf32> to vector<1x256xf32>
    %29 = arith.addf %26, %28 : vector<1x256xf32>
    %cst_19 = arith.constant 0.000000e+00 : f32
    %30 = vector.broadcast %cst_19 : f32 to vector<1x256xf32>
    %31 = arith.subf %30, %29 : vector<1x256xf32>
    %32 = math.exp %31 : vector<1x256xf32>
    %cst_20 = arith.constant 1.000000e+00 : f32
    %33 = vector.broadcast %cst_20 : f32 to vector<1x256xf32>
    %34 = arith.addf %33, %32 : vector<1x256xf32>
    %35 = tpu.reciprocal %34 {approx = true} : vector<1x256xf32> -> vector<1x256xf32>
    %c0_21 = arith.constant 0 : index
    %c0_22 = arith.constant 0 : index
    %36 = vector.load %arg8[%c0_21, %c0_22] : memref<1x256xf32, #tpu.memory_space<vmem>>, vector<1x256xf32>
    tpu.vector_store %arg8[%c0_21, %c0_22], %35 {strides = array<i32>} : memref<1x256xf32, #tpu.memory_space<vmem>>, vector<1x256xf32>,
    return
  }
  func.func @transform_0(%arg0: i32) -> (i32, i32) {
    %c0_i32 = arith.constant 0 : i32
    %c0_i32_0 = arith.constant 0 : i32
    return %c0_i32, %arg0 : i32, i32
  }
  func.func @transform_1(%arg0: i32) -> (i32, i32) {
    %c0_i32 = arith.constant 0 : i32
    %c0_i32_0 = arith.constant 0 : i32
    %c0_i32_1 = arith.constant 0 : i32
    return %c0_i32, %c0_i32_0 : i32, i32
  }
  func.func @transform_2(%arg0: i32) -> (i32, i32) {
    %c0_i32 = arith.constant 0 : i32
    %c0_i32_0 = arith.constant 0 : i32
    %c0_i32_1 = arith.constant 0 : i32
    return %c0_i32, %c0_i32_0 : i32, i32
  }
  func.func @transform_3(%arg0: i32) -> (i32, i32) {
    %c0_i32 = arith.constant 0 : i32
    %c0_i32_0 = arith.constant 0 : i32
    %c0_i32_1 = arith.constant 0 : i32
    return %c0_i32, %c0_i32_0 : i32, i32
  }
  func.func @transform_4(%arg0: i32) -> (i32, i32) {
    %c0_i32 = arith.constant 0 : i32
    %c0_i32_0 = arith.constant 0 : i32
    %c0_i32_1 = arith.constant 0 : i32
    return %c0_i32, %c0_i32_0 : i32, i32
  }
  func.func @transform_5(%arg0: i32) -> (i32, i32) {
    %c0_i32 = arith.constant 0 : i32
    %c0_i32_0 = arith.constant 0 : i32
    %c0_i32_1 = arith.constant 0 : i32
    return %c0_i32, %c0_i32_0 : i32, i32
  }
  func.func @transform_6(%arg0: i32) -> (i32, i32) {
    %c0_i32 = arith.constant 0 : i32
    %c0_i32_0 = arith.constant 0 : i32
    %c0_i32_1 = arith.constant 0 : i32
    return %c0_i32, %c0_i32_0 : i32, i32
  }
  func.func @transform_7(%arg0: i32) -> (i32, i32) {
    %c0_i32 = arith.constant 0 : i32
    %c0_i32_0 = arith.constant 0 : i32
    return %c0_i32, %arg0 : i32, i32
  }
}

</mosaic_0001>

<bundles_post_ra>
// kernel: ltm_discriminator.1
= control target key start
LH: loop header
LB: loop body
LE: loop exit
PB: predicated region body
PF: predicated region fallthrough
CT: control target
= control target key end

     0   :  { %v3530_v0 = vmov 0   ;;  %vm661_vm0 = vcmask 261120   ;;  %s4627_s2 = inlined_call_operand.vmem [shape: f32[512,1], index: 2, kind: input, shape index: {}]   ;;  %s4628_s0 = inlined_call_operand.vmem [shape: bf16[32,256], index: 0, kind: input, shape index: {}]   ;;  %s4629_s1 = inlined_call_operand.vmem [shape: bf16[512,32], index: 1, kind: input, shape index: {}]   ;;  %s4630_s6 = inlined_call_operand.<no memory space> [shape: f32[1,1], index: 6, kind: input, shape index: {}]   ;;  %s4631_s4 = inlined_call_operand.vmem [shape: f32[256,1], index: 4, kind: input, shape index: {}]   ;;  %s4632_s5 = inlined_call_operand.vmem [shape: f32[256,1], index: 5, kind: input, shape index: {}]   ;;  %s4633_s3 = inlined_call_operand.vmem [shape: bf16[256,512], index: 3, kind: input, shape index: {}]   ;;  %s4634_s7 = inlined_call_operand.vmem [shape: f32[1,256], index: 7, kind: output, shape index: {}]  }
   0x1   :  { %3387 = vset.pattern.permute.xlu1 %v3530_v0  ;;  %3386 = vset.pattern.permute.xlu0 %v3530_v0  ;;  %v99_v1 = vld [vmem:[%s4627_s2 + $0x10] sm:$0xff]  ;;  %v97_v2 = vld [vmem:[%s4627_s2] sm:$0xff]  ;;  %v100_v5 = vld [vmem:[%s4627_s2 + $0x18] sm:$0xff] }
   0x2   :  { %173 = vperm.xlu1 %3387, %v99_v1   ;;  %163 = vperm.xlu0 %3386, %v97_v2   ;;  %v3388_v3 = vld [vmem:[%s4628_s0 + $0x4] ss:$8 sps:$4 sm:$0xff]   ;;  %v3390_v4 = vld [vmem:[%s4628_s0] ss:$8 sps:$4 sm:$0xff]   ;;  %v3391_v7 = vld [vmem:[%s4628_s0 + $0x14] ss:$8 sps:$4 sm:$0xff]  }
   0x3   :  { %v98_v6 = vld [vmem:[%s4627_s2 + $0x8] sm:$0xff]  ;;  %790 = vmatprep.mubr.bf16.mxu0 %v3530_v0  ;;  %758 = vmatprep.subr.bf16.mxu0 %v3388_v3  ;;  %v3393_v8 = vld [vmem:[%s4628_s0 + $0x10] ss:$8 sps:$4 sm:$0xff]   ;;  %v101_v10 = vld [vmem:[%s4627_s2 + $0x20] sm:$0xff] }
   0x4   :  { %759 = vmatpush1.bf16.msra.mxu0 %v3390_v4  ;;  %v102_v9 = vld [vmem:[%s4627_s2 + $0x28] sm:$0xff]  ;;  %v3394_v11 = vld [vmem:[%s4629_s1] sm:$0xff]   ;;  %v104_v12 = vld [vmem:[%s4627_s2 + $0x38] sm:$0xff] }
   0x5   :  { %760 = vmatprep.subr.bf16.mxu0 %v3391_v7  ;;  %v103_v13 = vld [vmem:[%s4627_s2 + $0x30] sm:$0xff]  ;;  %v106_v14 = vld [vmem:[%s4627_s2 + $0x48] sm:$0xff]  ;;  %v105_v15 = vld [vmem:[%s4627_s2 + $0x40] sm:$0xff] }
   0x6   :  { %178 = vperm.xlu1 %3387, %v100_v5   ;;  %168 = vperm.xlu0 %3386, %v98_v6   ;;  %v3395_v16 = vld [vmem:[%s4629_s1 + $0x8] sm:$0xff]   ;;  %v108_v17 = vld [vmem:[%s4627_s2 + $0x58] sm:$0xff]  ;;  %v107_v18 = vld [vmem:[%s4627_s2 + $0x50] sm:$0xff] }
   0x7   :  { %v110_v19 = vld [vmem:[%s4627_s2 + $0x68] sm:$0xff]  ;;  %v109_v20 = vld [vmem:[%s4627_s2 + $0x60] sm:$0xff]  ;;  %v3396_v21 = vld [vmem:[%s4629_s1 + $0x10] sm:$0xff]  }
   0x8   :  { %761 = vmatpush1.bf16.msra.mxu0 %v3393_v8  ;;  %v112_v22 = vld [vmem:[%s4627_s2 + $0x78] sm:$0xff]  ;;  %v111_v23 = vld [vmem:[%s4627_s2 + $0x70] sm:$0xff]  ;;  %v114_v24 = vld [vmem:[%s4627_s2 + $0x88] sm:$0xff] }
   0x9   :  { %v113_v25 = vld [vmem:[%s4627_s2 + $0x80] sm:$0xff]  ;;  %v3397_v26 = vld [vmem:[%s4629_s1 + $0x18] sm:$0xff]   ;;  %v115_v28 = vld [vmem:[%s4627_s2 + $0x90] sm:$0xff] }
   0xa   :  { %188 = vperm.xlu1 %3387, %v102_v9   ;;  %183 = vperm.xlu0 %3386, %v101_v10   ;;  %v116_v27 = vld [vmem:[%s4627_s2 + $0x98] sm:$0xff]  ;;  %v118_v29 = vld [vmem:[%s4627_s2 + $0xa8] sm:$0xff]  ;;  %v117_v30 = vld [vmem:[%s4627_s2 + $0xa0] sm:$0xff] }
   0xb   :  { %3128 = vmatmul.mubr.msk.bf16.vlgmr.msra.gmra.mrb[0].mxu0 %vm661_vm0, %v3394_v11  ;;  %v3398_v31 = vld [vmem:[%s4629_s1 + $0x20] sm:$0xff]   ;;  %v120_v32 = vld [vmem:[%s4627_s2 + $0xb8] sm:$0xff]  ;;  %v119_v33 = vld [vmem:[%s4627_s2 + $0xb0] sm:$0xff] }
   0xc   :  { %800 = vmatprep.mubr.bf16.mxu0 %v3530_v0  ;;  %v122_v34 = vld [vmem:[%s4627_s2 + $0xc8] sm:$0xff]  ;;  %v121_v35 = vld [vmem:[%s4627_s2 + $0xc0] sm:$0xff]  ;;  %v124_v37 = vld [vmem:[%s4627_s2 + $0xd8] sm:$0xff] }
   0xd   :  { %v3399_v36 = vld [vmem:[%s4629_s1 + $0x28] sm:$0xff]   ;;  %v123_v38 = vld [vmem:[%s4627_s2 + $0xd0] sm:$0xff]  ;;  %v125_v40 = vld [vmem:[%s4627_s2 + $0xe0] sm:$0xff] }
   0xe   :  { %198 = vperm.xlu1 %3387, %v104_v12   ;;  %193 = vperm.xlu0 %3386, %v103_v13   ;;  %v126_v39 = vld [vmem:[%s4627_s2 + $0xe8] sm:$0xff]  ;;  %v3400_v41 = vld [vmem:[%s4629_s1 + $0x30] sm:$0xff]   ;;  %v128_v42 = vld [vmem:[%s4627_s2 + $0xf8] sm:$0xff] }
   0xf   :  { %v127_v43 = vld [vmem:[%s4627_s2 + $0xf0] sm:$0xff]  ;;  %v130_v44 = vld [vmem:[%s4627_s2 + $0x108] sm:$0xff]  ;;  %v129_v45 = vld [vmem:[%s4627_s2 + $0x100] sm:$0xff] }
  0x10   :  { %v3401_v46 = vld [vmem:[%s4629_s1 + $0x38] sm:$0xff]   ;;  %v131_v48 = vld [vmem:[%s4627_s2 + $0x110] sm:$0xff]  ;;  %v134_v49 = vld [vmem:[%s4627_s2 + $0x128] sm:$0xff] }
  0x11   :  { %v132_v47 = vld [vmem:[%s4627_s2 + $0x118] sm:$0xff]  ;;  %v133_v50 = vld [vmem:[%s4627_s2 + $0x120] sm:$0xff]  ;;  %v135_v53 = vld [vmem:[%s4627_s2 + $0x130] sm:$0xff] }
  0x12   :  { %208 = vperm.xlu1 %3387, %v106_v14   ;;  %203 = vperm.xlu0 %3386, %v105_v15   ;;  %v3402_v51 = vld [vmem:[%s4629_s1 + $0x40] sm:$0xff]   ;;  %v136_v52 = vld [vmem:[%s4627_s2 + $0x138] sm:$0xff]  ;;  %v138_v54 = vld [vmem:[%s4627_s2 + $0x148] sm:$0xff] }
  0x13   :  { %3129 = vmatmul.mubr.msk.bf16.gmra.mrb[4].mxu0 %vm661_vm0, %v3395_v16  ;;  %v137_v55 = vld [vmem:[%s4627_s2 + $0x140] sm:$0xff]  ;;  %v3403_v56 = vld [vmem:[%s4629_s1 + $0x48] sm:$0xff]   ;;  %v140_v57 = vld [vmem:[%s4627_s2 + $0x158] sm:$0xff] }
  0x14   :  { %810 = vmatprep.mubr.bf16.mxu0 %v3530_v0  ;;  %v139_v58 = vld [vmem:[%s4627_s2 + $0x150] sm:$0xff]  ;;  %v142_v59 = vld [vmem:[%s4627_s2 + $0x168] sm:$0xff]  ;;  %v141_v60 = vld [vmem:[%s4627_s2 + $0x160] sm:$0xff] }
  0x15   :  { %v3404_v61 = vld [vmem:[%s4629_s1 + $0x50] sm:$0xff]   ;;  %v144_v62 = vld [vmem:[%s4627_s2 + $0x178] sm:$0xff]  ;;  %v146_v1 = vld [vmem:[%s4627_s2 + $0x188] sm:$0xff] }
  0x16   :  { %218 = vperm.xlu1 %3387, %v108_v17   ;;  %213 = vperm.xlu0 %3386, %v107_v18   ;;  %v143_v63 = vld [vmem:[%s4627_s2 + $0x170] sm:$0xff]  ;;  %v145_v2 = vld [vmem:[%s4627_s2 + $0x180] sm:$0xff]  ;;  %v3405_v3 = vld [vmem:[%s4629_s1 + $0x58] sm:$0xff]  }
  0x17   :  { %v148_v4 = vld [vmem:[%s4627_s2 + $0x198] sm:$0xff]  ;;  %v147_v5 = vld [vmem:[%s4627_s2 + $0x190] sm:$0xff]  ;;  %v150_v6 = vld [vmem:[%s4627_s2 + $0x1a8] sm:$0xff] }
  0x18   :  { %v149_v7 = vld [vmem:[%s4627_s2 + $0x1a0] sm:$0xff]  ;;  %v152_v9 = vld [vmem:[%s4627_s2 + $0x1b8] sm:$0xff]  ;;  %v151_v10 = vld [vmem:[%s4627_s2 + $0x1b0] sm:$0xff] }
  0x19   :  { %v3406_v8 = vld [vmem:[%s4629_s1 + $0x60] sm:$0xff]   ;;  %v154_v11 = vld [vmem:[%s4627_s2 + $0x1c8] sm:$0xff]  ;;  %v156_v14 = vld [vmem:[%s4627_s2 + $0x1d8] sm:$0xff] }
  0x1a   :  { %228 = vperm.xlu1 %3387, %v110_v19   ;;  %223 = vperm.xlu0 %3386, %v109_v20   ;;  %v153_v12 = vld [vmem:[%s4627_s2 + $0x1c0] sm:$0xff]  ;;  %v3407_v13 = vld [vmem:[%s4629_s1 + $0x68] sm:$0xff]   ;;  %v155_v15 = vld [vmem:[%s4627_s2 + $0x1d0] sm:$0xff] }
  0x1b   :  { %3130 = vmatmul.mubr.msk.bf16.gmra.mrb[8].mxu0 %vm661_vm0, %v3396_v21  ;;  %v158_v16 = vld [vmem:[%s4627_s2 + $0x1e8] sm:$0xff]  ;;  %v157_v17 = vld [vmem:[%s4627_s2 + $0x1e0] sm:$0xff]  ;;  %v3408_v18 = vld [vmem:[%s4629_s1 + $0x70] sm:$0xff]   ;;  %v12_v21 = vstv %s4630_s6 }
  0x1c   :  { %820 = vmatprep.mubr.bf16.mxu0 %v3530_v0  ;;  %v160_v19 = vld [vmem:[%s4627_s2 + $0x1f8] sm:$0xff]  ;;  %v159_v20 = vld [vmem:[%s4627_s2 + $0x1f0] sm:$0xff]  ;;  %13 = vst [vmem:[#allocation2] sm:$0x1] %v12_v21 }
  0x1e   :  { %238 = vperm.xlu1 %3387, %v112_v22   ;;  %233 = vperm.xlu0 %3386, %v111_v23   ;;  %v1624_v22 = vld [vmem:[%s4631_s4 + $0x8] sm:$0xff]  ;;  %v1623_v23 = vld [vmem:[%s4631_s4] sm:$0xff] }
  0x22   :  { %248 = vperm.xlu1 %3387, %v114_v24   ;;  %243 = vperm.xlu0 %3386, %v113_v25   ;;  %v3409_v24 = vld [vmem:[%s4629_s1 + $0x78] sm:$0xff]  }
  0x23   :  { %3131 = vmatmul.mubr.msk.bf16.gmra.mrb[12].mxu0 %vm661_vm0, %v3397_v26  ;;  %v1626_v25 = vld [vmem:[%s4631_s4 + $0x18] sm:$0xff]  ;;  %v1625_v26 = vld [vmem:[%s4631_s4 + $0x10] sm:$0xff] }
  0x24   :  { %830 = vmatprep.mubr.bf16.mxu0 %v3530_v0 }
  0x26   :  { %258 = vperm.xlu1 %3387, %v116_v27   ;;  %253 = vperm.xlu0 %3386, %v115_v28   ;;  %v1628_v27 = vld [vmem:[%s4631_s4 + $0x28] sm:$0xff]  ;;  %v1627_v28 = vld [vmem:[%s4631_s4 + $0x20] sm:$0xff] }
  0x2a   :  { %268 = vperm.xlu1 %3387, %v118_v29   ;;  %263 = vperm.xlu0 %3386, %v117_v30   ;;  %v3410_v29 = vld [vmem:[%s4629_s1 + $0x80] sm:$0xff]   ;;  %v1630_v30 = vld [vmem:[%s4631_s4 + $0x38] sm:$0xff] }
  0x2b   :  { %3132 = vmatmul.mubr.msk.bf16.gmra.mrb[16].mxu0 %vm661_vm0, %v3398_v31  ;;  %v1629_v31 = vld [vmem:[%s4631_s4 + $0x30] sm:$0xff] }
  0x2c   :  { %840 = vmatprep.mubr.bf16.mxu0 %v3530_v0 }
  0x2e   :  { %278 = vperm.xlu1 %3387, %v120_v32   ;;  %273 = vperm.xlu0 %3386, %v119_v33   ;;  %v1632_v32 = vld [vmem:[%s4631_s4 + $0x48] sm:$0xff]  ;;  %v1631_v33 = vld [vmem:[%s4631_s4 + $0x40] sm:$0xff] }
  0x32   :  { %288 = vperm.xlu1 %3387, %v122_v34   ;;  %283 = vperm.xlu0 %3386, %v121_v35   ;;  %v3411_v34 = vld [vmem:[%s4629_s1 + $0x88] sm:$0xff]   ;;  %v1634_v35 = vld [vmem:[%s4631_s4 + $0x58] sm:$0xff] }
  0x33   :  { %3133 = vmatmul.mubr.msk.bf16.gmra.mrb[20].mxu0 %vm661_vm0, %v3399_v36  ;;  %v1633_v36 = vld [vmem:[%s4631_s4 + $0x50] sm:$0xff] }
  0x34   :  { %850 = vmatprep.mubr.bf16.mxu0 %v3530_v0 }
  0x36   :  { %298 = vperm.xlu1 %3387, %v124_v37   ;;  %293 = vperm.xlu0 %3386, %v123_v38   ;;  %v1636_v37 = vld [vmem:[%s4631_s4 + $0x68] sm:$0xff]  ;;  %v1635_v38 = vld [vmem:[%s4631_s4 + $0x60] sm:$0xff] }
  0x3a   :  { %308 = vperm.xlu1 %3387, %v126_v39   ;;  %303 = vperm.xlu0 %3386, %v125_v40   ;;  %v3412_v39 = vld [vmem:[%s4629_s1 + $0x90] sm:$0xff]   ;;  %v1638_v40 = vld [vmem:[%s4631_s4 + $0x78] sm:$0xff] }
  0x3b   :  { %3134 = vmatmul.mubr.msk.bf16.gmra.mrb[24].mxu0 %vm661_vm0, %v3400_v41  ;;  %v1637_v41 = vld [vmem:[%s4631_s4 + $0x70] sm:$0xff] }
  0x3c   :  { %860 = vmatprep.mubr.bf16.mxu0 %v3530_v0 }
  0x3e   :  { %318 = vperm.xlu1 %3387, %v128_v42   ;;  %313 = vperm.xlu0 %3386, %v127_v43   ;;  %v1640_v42 = vld [vmem:[%s4631_s4 + $0x88] sm:$0xff]  ;;  %v1639_v43 = vld [vmem:[%s4631_s4 + $0x80] sm:$0xff] }
  0x42   :  { %328 = vperm.xlu1 %3387, %v130_v44   ;;  %323 = vperm.xlu0 %3386, %v129_v45   ;;  %v3413_v44 = vld [vmem:[%s4629_s1 + $0x98] sm:$0xff]  }
  0x43   :  { %3135 = vmatmul.mubr.msk.bf16.gmra.mrb[28].mxu0 %vm661_vm0, %v3401_v46  ;;  %v1642_v45 = vld [vmem:[%s4631_s4 + $0x98] sm:$0xff]  ;;  %v1641_v46 = vld [vmem:[%s4631_s4 + $0x90] sm:$0xff] }
  0x44   :  { %870 = vmatprep.mubr.bf16.mxu0 %v3530_v0 }
  0x46   :  { %338 = vperm.xlu1 %3387, %v132_v47   ;;  %333 = vperm.xlu0 %3386, %v131_v48   ;;  %v2713_v47 = vld [vmem:[%s4632_s5] sm:$0xff] }
  0x47   :  { %v1643_v48 = vld [vmem:[%s4631_s4 + $0xa0] sm:$0xff] }
  0x4a   :  { %348 = vperm.xlu1 %3387, %v134_v49   ;;  %343 = vperm.xlu0 %3386, %v133_v50   ;;  %v3414_v50 = vld [vmem:[%s4629_s1 + $0xa0] sm:$0xff]  }
  0x4b   :  { %3136 = vmatmul.mubr.msk.bf16.gmra.mrb[32].mxu0 %vm661_vm0, %v3402_v51 }
  0x4c   :  { %880 = vmatprep.mubr.bf16.mxu0 %v3530_v0 }
  0x4e   :  { %358 = vperm.xlu1 %3387, %v136_v52   ;;  %353 = vperm.xlu0 %3386, %v135_v53   ;;  %v2715_v52 = vld [vmem:[%s4632_s5 + $0x10] sm:$0xff]  ;;  %v2714_v53 = vld [vmem:[%s4632_s5 + $0x8] sm:$0xff] }
  0x52   :  { %368 = vperm.xlu1 %3387, %v138_v54   ;;  %363 = vperm.xlu0 %3386, %v137_v55   ;;  %v2717_v55 = vld [vmem:[%s4632_s5 + $0x20] sm:$0xff] }
  0x53   :  { %3137 = vmatmul.mubr.msk.bf16.gmra.mrb[36].mxu0 %vm661_vm0, %v3403_v56  ;;  %v2716_v56 = vld [vmem:[%s4632_s5 + $0x18] sm:$0xff] }
  0x54   :  { %890 = vmatprep.mubr.bf16.mxu0 %v3530_v0 }
  0x56   :  { %378 = vperm.xlu1 %3387, %v140_v57   ;;  %373 = vperm.xlu0 %3386, %v139_v58   ;;  %v3415_v58 = vld [vmem:[%s4629_s1 + $0xa8] sm:$0xff]  }
  0x5a   :  { %388 = vperm.xlu1 %3387, %v142_v59   ;;  %383 = vperm.xlu0 %3386, %v141_v60   ;;  %v2719_v59 = vld [vmem:[%s4632_s5 + $0x30] sm:$0xff]  ;;  %v2718_v60 = vld [vmem:[%s4632_s5 + $0x28] sm:$0xff] }
  0x5b   :  { %3138 = vmatmul.mubr.msk.bf16.gmra.mrb[40].mxu0 %vm661_vm0, %v3404_v61 }
  0x5c   :  { %900 = vmatprep.mubr.bf16.mxu0 %v3530_v0 }
  0x5e   :  { %398 = vperm.xlu1 %3387, %v144_v62   ;;  %393 = vperm.xlu0 %3386, %v143_v63   ;;  %v2721_v63 = vld [vmem:[%s4632_s5 + $0x40] sm:$0xff] }
  0x62   :  { %408 = vperm.xlu1 %3387, %v146_v1   ;;  %403 = vperm.xlu0 %3386, %v145_v2   ;;  %v2720_v1 = vld [vmem:[%s4632_s5 + $0x38] sm:$0xff]  ;;  %v3416_v2 = vld [vmem:[%s4629_s1 + $0xb0] sm:$0xff]  }
  0x63   :  { %3139 = vmatmul.mubr.msk.bf16.gmra.mrb[44].mxu0 %vm661_vm0, %v3405_v3 }
  0x64   :  { %910 = vmatprep.mubr.bf16.mxu0 %v3530_v0 }
  0x66   :  { %418 = vperm.xlu1 %3387, %v148_v4   ;;  %413 = vperm.xlu0 %3386, %v147_v5   ;;  %v2723_v4 = vld [vmem:[%s4632_s5 + $0x50] sm:$0xff]  ;;  %v2722_v5 = vld [vmem:[%s4632_s5 + $0x48] sm:$0xff] }
  0x6a   :  { %428 = vperm.xlu1 %3387, %v150_v6   ;;  %423 = vperm.xlu0 %3386, %v149_v7   ;;  %v2725_v7 = vld [vmem:[%s4632_s5 + $0x60] sm:$0xff] }
  0x6b   :  { %3140 = vmatmul.mubr.msk.bf16.gmra.mrb[48].mxu0 %vm661_vm0, %v3406_v8  ;;  %v2724_v8 = vld [vmem:[%s4632_s5 + $0x58] sm:$0xff] }
  0x6c   :  { %920 = vmatprep.mubr.bf16.mxu0 %v3530_v0 }
  0x6e   :  { %438 = vperm.xlu1 %3387, %v152_v9   ;;  %433 = vperm.xlu0 %3386, %v151_v10   ;;  %v3417_v10 = vld [vmem:[%s4629_s1 + $0xb8] sm:$0xff]  }
  0x72   :  { %448 = vperm.xlu1 %3387, %v154_v11   ;;  %443 = vperm.xlu0 %3386, %v153_v12   ;;  %v2727_v12 = vld [vmem:[%s4632_s5 + $0x70] sm:$0xff] }
  0x73   :  { %3141 = vmatmul.mubr.msk.bf16.gmra.mrb[52].mxu0 %vm661_vm0, %v3407_v13  ;;  %v2726_v13 = vld [vmem:[%s4632_s5 + $0x68] sm:$0xff] }
  0x74   :  { %930 = vmatprep.mubr.bf16.mxu0 %v3530_v0 }
  0x76   :  { %458 = vperm.xlu1 %3387, %v156_v14   ;;  %453 = vperm.xlu0 %3386, %v155_v15   ;;  %v2729_v15 = vld [vmem:[%s4632_s5 + $0x80] sm:$0xff] }
  0x7a   :  { %468 = vperm.xlu1 %3387, %v158_v16   ;;  %463 = vperm.xlu0 %3386, %v157_v17   ;;  %v2728_v16 = vld [vmem:[%s4632_s5 + $0x78] sm:$0xff] }
  0x7b   :  { %3142 = vmatmul.mubr.msk.bf16.gmra.mrb[56].mxu0 %vm661_vm0, %v3408_v18  ;;  %v3418_v18 = vld [vmem:[%s4629_s1 + $0xc0] sm:$0xff]  }
  0x7c   :  { %940 = vmatprep.mubr.bf16.mxu0 %v3530_v0 }
  0x7e   :  { %478 = vperm.xlu1 %3387, %v160_v19   ;;  %473 = vperm.xlu0 %3386, %v159_v20   ;;  %v2731_v19 = vld [vmem:[%s4632_s5 + $0x90] sm:$0xff]  ;;  %v2730_v20 = vld [vmem:[%s4632_s5 + $0x88] sm:$0xff] }
  0x81   :  { %v3948_v49 = vpop.permute.xlu0 %163  ;;  %v3953_v51 = vpop.permute.xlu1 %173 }
  0x82   :  { %1662 = vperm.xlu1 %3387, %v1624_v22   ;;  %1657 = vperm.xlu0 %3386, %v1623_v23   ;;  %v2732_v23 = vld [vmem:[%s4632_s5 + $0x98] sm:$0xff] }
  0x83   :  { %3143 = vmatmul.mubr.msk.bf16.gmra.mrb[60].mxu0 %vm661_vm0, %v3409_v24  ;;  %v1644_v24 = vld [vmem:[%s4631_s4 + $0xa8] sm:$0xff] }
  0x84   :  { %950 = vmatprep.mubr.bf16.mxu0 %v3530_v0 }
  0x85   :  { %v3963_v54 = vpop.permute.xlu0 %168  ;;  %v3971_v57 = vpop.permute.xlu1 %178 }
  0x86   :  { %1672 = vperm.xlu1 %3387, %v1626_v25   ;;  %1667 = vperm.xlu0 %3386, %v1625_v26   ;;  %v3419_v25 = vld [vmem:[%s4629_s1 + $0xc8] sm:$0xff]  }
  0x89   :  { %v3982_v61 = vpop.permute.xlu0 %183  ;;  %v3986_v62 = vpop.permute.xlu1 %188 }
  0x8a   :  { %1682 = vperm.xlu1 %3387, %v1628_v27   ;;  %1677 = vperm.xlu0 %3386, %v1627_v28   ;;  %v2733_v27 = vld [vmem:[%s4632_s5 + $0xa0] sm:$0xff]  ;;  %v1645_v28 = vld [vmem:[%s4631_s4 + $0xb0] sm:$0xff] }
  0x8b   :  { %3144 = vmatmul.mubr.msk.bf16.gmra.mrb[64].mxu0 %vm661_vm0, %v3410_v29 }
  0x8c   :  { %960 = vmatprep.mubr.bf16.mxu0 %v3530_v0 }
  0x8d   :  { %v3997_v3 = vpop.permute.xlu0 %193  ;;  %v4005_v6 = vpop.permute.xlu1 %198 }
  0x8e   :  { %1692 = vperm.xlu1 %3387, %v1630_v30   ;;  %1687 = vperm.xlu0 %3386, %v1629_v31   ;;  %v2734_v30 = vld [vmem:[%s4632_s5 + $0xa8] sm:$0xff]  ;;  %v1646_v31 = vld [vmem:[%s4631_s4 + $0xb8] sm:$0xff] }
  0x91   :  { %v4015_v9 = vpop.permute.xlu0 %203  ;;  %v4020_v11 = vpop.permute.xlu1 %208 }
  0x92   :  { %1702 = vperm.xlu1 %3387, %v1632_v32   ;;  %1697 = vperm.xlu0 %3386, %v1631_v33   ;;  %v3420_v33 = vld [vmem:[%s4629_s1 + $0xd0] sm:$0xff]  }
  0x93   :  { %3145 = vmatmul.mubr.msk.bf16.gmra.mrb[68].mxu0 %vm661_vm0, %v3411_v34 }
  0x94   :  { %970 = vmatprep.mubr.bf16.mxu0 %v3530_v0 }
  0x95   :  { %v4030_v14 = vpop.permute.xlu0 %213  ;;  %v4038_v17 = vpop.permute.xlu1 %218 }
  0x96   :  { %1712 = vperm.xlu1 %3387, %v1634_v35   ;;  %1707 = vperm.xlu0 %3386, %v1633_v36   ;;  %v2735_v35 = vld [vmem:[%s4632_s5 + $0xb0] sm:$0xff]  ;;  %v1647_v36 = vld [vmem:[%s4631_s4 + $0xc0] sm:$0xff] }
  0x99   :  { %v4049_v21 = vpop.permute.xlu0 %223  ;;  %v4053_v22 = vpop.permute.xlu1 %228 }
  0x9a   :  { %1722 = vperm.xlu1 %3387, %v1636_v37   ;;  %1717 = vperm.xlu0 %3386, %v1635_v38  }
  0x9b   :  { %3146 = vmatmul.mubr.msk.bf16.gmra.mrb[72].mxu0 %vm661_vm0, %v3412_v39  ;;  %v2736_v39 = vld [vmem:[%s4632_s5 + $0xb8] sm:$0xff] }
  0x9c   :  { %980 = vmatprep.mubr.bf16.mxu0 %v3530_v0 }
  0x9d   :  { %v4064_v26 = vpop.permute.xlu0 %233  ;;  %v4072_v29 = vpop.permute.xlu1 %238 }
  0x9e   :  { %1732 = vperm.xlu1 %3387, %v1638_v40   ;;  %1727 = vperm.xlu0 %3386, %v1637_v41   ;;  %v1648_v40 = vld [vmem:[%s4631_s4 + $0xc8] sm:$0xff] }
  0xa1   :  { %v4082_v32 = vpop.permute.xlu0 %243  ;;  %v4087_v34 = vpop.permute.xlu1 %248 }
  0xa2   :  { %1742 = vperm.xlu1 %3387, %v1640_v42   ;;  %1737 = vperm.xlu0 %3386, %v1639_v43  }
  0xa3   :  { %3147 = vmatmul.mubr.msk.bf16.gmra.mrb[76].mxu0 %vm661_vm0, %v3413_v44  ;;  %v3421_v44 = vld [vmem:[%s4629_s1 + $0xd8] sm:$0xff]  }
  0xa4   :  { %990 = vmatprep.mubr.bf16.mxu0 %v3530_v0 }
  0xa5   :  { %v4097_v37 = vpop.permute.xlu0 %253  ;;  %v4105_v41 = vpop.permute.xlu1 %258 }
  0xa6   :  { %1752 = vperm.xlu1 %3387, %v1642_v45   ;;  %1747 = vperm.xlu0 %3386, %v1641_v46  }
  0xaa   :  { %2747 = vperm.xlu1 %3387, %v2713_v47   ;;  %1757 = vperm.xlu0 %3386, %v1643_v48  }
  0xab   :  { %3148 = vmatmul.mubr.msk.bf16.gmra.mrb[80].mxu0 %vm661_vm0, %v3414_v50 }
  0xac   :  { %1000 = vmatprep.mubr.bf16.mxu0 %v3530_v0 }
  0xae   :  { %2757 = vperm.xlu1 %3387, %v2715_v52   ;;  %2752 = vperm.xlu0 %3386, %v2714_v53   ;;  %v2737_v52 = vld [vmem:[%s4632_s5 + $0xc0] sm:$0xff]  ;;  %v1649_v53 = vld [vmem:[%s4631_s4 + $0xd0] sm:$0xff] }
  0xb2   :  { %2767 = vperm.xlu1 %3387, %v2717_v55   ;;  %2762 = vperm.xlu0 %3386, %v2716_v56   ;;  %v4119_v55 = vpop.permute.xlu0 %263 }
  0xb3   :  { %3149 = vmatmul.mubr.msk.bf16.gmra.mrb[84].mxu0 %vm661_vm0, %v3415_v58 }
  0xb4   :  { %1010 = vmatprep.mubr.bf16.mxu0 %v3530_v0 }
  0xb6   :  { %2777 = vperm.xlu1 %3387, %v2719_v59   ;;  %2772 = vperm.xlu0 %3386, %v2718_v60   ;;  %v2738_v59 = vld [vmem:[%s4632_s5 + $0xc8] sm:$0xff]  ;;  %v1650_v60 = vld [vmem:[%s4631_s4 + $0xd8] sm:$0xff] }
  0xba   :  { %2787 = vperm.xlu1 %3387, %v2721_v63   ;;  %2782 = vperm.xlu0 %3386, %v2720_v1   ;;  %v4130_v63 = vpop.permute.xlu1 %268 }
  0xbb   :  { %3150 = vmatmul.mubr.msk.bf16.gmra.mrb[88].mxu0 %vm661_vm0, %v3416_v2 }
  0xbc   :  { %1020 = vmatprep.mubr.bf16.mxu0 %v3530_v0 }
  0xbe   :  { %2797 = vperm.xlu1 %3387, %v2723_v4   ;;  %2792 = vperm.xlu0 %3386, %v2722_v5   ;;  %v3422_v5 = vld [vmem:[%s4629_s1 + $0xe0] sm:$0xff]  }
  0xc2   :  { %2807 = vperm.xlu1 %3387, %v2725_v7   ;;  %2802 = vperm.xlu0 %3386, %v2724_v8  }
  0xc3   :  { %3151 = vmatmul.mubr.msk.bf16.gmra.mrb[92].mxu0 %vm661_vm0, %v3417_v10 }
  0xc4   :  { %1030 = vmatprep.mubr.bf16.mxu0 %v3530_v0 }
  0xc6   :  { %2817 = vperm.xlu1 %3387, %v2727_v12   ;;  %2812 = vperm.xlu0 %3386, %v2726_v13  }
  0xca   :  { %2827 = vperm.xlu1 %3387, %v2729_v15   ;;  %2822 = vperm.xlu0 %3386, %v2728_v16  }
  0xcb   :  { %3152 = vmatmul.mubr.msk.bf16.gmra.mrb[96].mxu0 %vm661_vm0, %v3418_v18  ;;  %v3431_v18 = vld [vmem:[%s4633_s3 + $0x64] ss:$16 sps:$4 sm:$0xff]  }
  0xcc   :  { %1040 = vmatprep.mubr.bf16.mxu0 %v3530_v0  ;;  %2197 = vmatprep.mubr.bf16.mxu1 %v3431_v18 }
  0xce   :  { %2837 = vperm.xlu1 %3387, %v2731_v19   ;;  %2832 = vperm.xlu0 %3386, %v2730_v20   ;;  %v4141_v19 = vpop.permute.xlu0 %273 }
  0xd2   :  { %2842 = vperm.xlu1 %3387, %v2732_v23   ;;  %1762 = vperm.xlu0 %3386, %v1644_v24   ;;  %v2739_v23 = vld [vmem:[%s4632_s5 + $0xd0] sm:$0xff] }
  0xd3   :  { %3153 = vmatmul.mubr.msk.bf16.gmra.mrb[100].mxu0 %vm661_vm0, %v3419_v25 }
  0xd4   :  { %1050 = vmatprep.mubr.bf16.mxu0 %v3530_v0 }
  0xd6   :  { %2847 = vperm.xlu1 %3387, %v2733_v27   ;;  %1767 = vperm.xlu0 %3386, %v1645_v28   ;;  %v4150_v28 = vpop.permute.xlu1 %278 }
  0xda   :  { %2852 = vperm.xlu1 %3387, %v2734_v30   ;;  %1772 = vperm.xlu0 %3386, %v1646_v31  }
  0xdb   :  { %3154 = vmatmul.mubr.msk.bf16.gmra.mrb[104].mxu0 %vm661_vm0, %v3420_v33 }
  0xdc   :  { %1060 = vmatprep.mubr.bf16.mxu0 %v3530_v0 }
  0xde   :  { %2857 = vperm.xlu1 %3387, %v2735_v35   ;;  %1777 = vperm.xlu0 %3386, %v1647_v36   ;;  %v792_v38 = vpop.f32.mrb[0].mxu0  ;;  %v2740_v35 = vld [vmem:[%s4632_s5 + $0xd8] sm:$0xff]  ;;  %v1652_v36 = vld [vmem:[%s4631_s4 + $0xe8] sm:$0xff] }
  0xdf   :  { %v793_v42 = vadd.f32 %v792_v38, %v3948_v49  ;;  %v794_v43 = vpop.f32.mrb[1].mxu0 }
  0xe0   :  { %v795_v45 = vadd.f32 %v794_v43, %v3948_v49  ;;  %v796_v46 = vpop.f32.mrb[2].mxu0  ;;  %v4165_v43 = vpop.permute.xlu0 %283 }
  0xe1   :  { %v1239_v47 = vmul.f32 0.2, %v793_v42  ;;  %v797_v48 = vadd.f32 %v796_v46, %v3963_v54  ;;  %v798_v50 = vpop.f32.mrb[3].mxu0  ;;  %vm1111_vm1 = vcmp.gt.f32.partialorder %v793_v42, 0.0 }
  0xe2   :  { %2862 = vperm.xlu1 %3387, %v2736_v39   ;;  %1782 = vperm.xlu0 %3386, %v1648_v40   ;;  %v1240_v56 = vmul.f32 0.2, %v795_v45  ;;  %v799_v49 = vadd.f32 %v798_v50, %v3963_v54  ;;  %vm1112_vm2 = vcmp.gt.f32.partialorder %v795_v45, 0.0 }
  0xe3   :  { %3155 = vmatmul.mubr.msk.bf16.gmra.mrb[108].mxu0 %vm661_vm0, %v3421_v44  ;;  %vm1113_vm3 = vcmp.gt.f32.partialorder %v797_v48, 0.0  ;;  %v1241_v58 = vmul.f32 0.2, %v797_v48  ;;  %v1367_v54 = vsel %vm1111_vm1, %v793_v42, %v1239_v47  ;;  %v3423_v42 = vld [vmem:[%s4629_s1 + $0xe8] sm:$0xff]  }
  0xe4   :  { %1070 = vmatprep.mubr.bf16.mxu0 %v3530_v0  ;;  %vm1114_vm4 = vcmp.gt.f32.partialorder %v799_v49, 0.0  ;;  %v1242_v1 = vmul.f32 0.2, %v799_v49  ;;  %v1368_v12 = vsel %vm1112_vm2, %v795_v45, %v1240_v56 }
  0xe5   :  { %v1369_v2 = vsel %vm1113_vm3, %v797_v48, %v1241_v58 }
  0xe6   :  { %2867 = vperm.xlu1 %3387, %v2737_v52   ;;  %1787 = vperm.xlu0 %3386, %v1649_v53   ;;  %v802_v4 = vpop.f32.mrb[4].mxu0  ;;  %v1559_v7 = vpack.c.bf16 %v1369_v2, %v1367_v54  ;;  %v1370_v13 = vsel %vm1114_vm4, %v799_v49, %v1242_v1  ;;  %v4170_v53 = vpop.permute.xlu1 %288  ;;  %v2741_v49 = vld [vmem:[%s4632_s5 + $0xe0] sm:$0xff] }
  0xe7   :  { %v803_v8 = vadd.f32 %v802_v4, %v3953_v51  ;;  %v804_v10 = vpop.f32.mrb[5].mxu0  ;;  %v1560_v16 = vpack.c.bf16 %v1370_v13, %v1368_v12  ;;  %v2742_v4 = vld [vmem:[%s4632_s5 + $0xe8] sm:$0xff]  ;;  %v3424_v13 = vld [vmem:[%s4629_s1 + $0xf0] sm:$0xff]  }
  0xe8   :  { %v805_v15 = vadd.f32 %v804_v10, %v3953_v51  ;;  %v806_v20 = vpop.f32.mrb[6].mxu0  ;;  %v1651_v51 = vld [vmem:[%s4631_s4 + $0xe0] sm:$0xff] }
  0xe9   :  { %v1243_v24 = vmul.f32 0.2, %v803_v8  ;;  %v807_v25 = vadd.f32 %v806_v20, %v3971_v57  ;;  %v808_v27 = vpop.f32.mrb[7].mxu0  ;;  %2135 = vmatprep.subr.bf16.mxu0 %v1560_v16  ;;  %3224 = vmatprep.subr.bf16.mxu1 %v1560_v16  ;;  %vm1115_vm5 = vcmp.gt.f32.partialorder %v803_v8, 0.0 }
  0xea   :  { %2872 = vperm.xlu1 %3387, %v2738_v59   ;;  %1792 = vperm.xlu0 %3386, %v1650_v60   ;;  %v1244_v30 = vmul.f32 0.2, %v805_v15  ;;  %v809_v31 = vadd.f32 %v808_v27, %v3971_v57  ;;  %vm1116_vm6 = vcmp.gt.f32.partialorder %v805_v15, 0.0 }
  0xeb   :  { %2136 = vmatpush1.bf16.msra.mxu0 %v1559_v7  ;;  %3240 = vmatpush1.bf16.msra.mxu1 %v1559_v7  ;;  %vm1117_vm7 = vcmp.gt.f32.partialorder %v807_v25, 0.0  ;;  %v1245_v33 = vmul.f32 0.2, %v807_v25  ;;  %v1371_v57 = vsel %vm1115_vm5, %v803_v8, %v1243_v24  ;;  %v4187_v7 = vpop.permute.xlu0 %293 }
  0xec   :  { %3156 = vmatmul.mubr.msk.bf16.gmra.mrb[112].mxu0 %vm661_vm0, %v3422_v5  ;;  %vm1118_vm8 = vcmp.gt.f32.partialorder %v809_v31, 0.0  ;;  %v1246_v38 = vmul.f32 0.2, %v809_v31  ;;  %v1372_v47 = vsel %vm1116_vm6, %v805_v15, %v1244_v30  ;;  %v1654_v5 = vld [vmem:[%s4631_s4 + $0xf8] sm:$0xff]  ;;  %v4194_v15 = vpop.permute.xlu1 %298 }
  0xed   :  { %v1373_v39 = vsel %vm1117_vm7, %v807_v25, %v1245_v33  ;;  %1080 = vmatprep.mubr.bf16.mxu0 %v3530_v0 }
  0xee   :  { %2877 = vperm.xlu1 %3387, %v2739_v23   ;;  %1797 = vperm.xlu0 %3386, %v1651_v51   ;;  %v812_v40 = vpop.f32.mrb[8].mxu0  ;;  %v1561_v44 = vpack.c.bf16 %v1373_v39, %v1371_v57  ;;  %v1374_v48 = vsel %vm1118_vm8, %v809_v31, %v1246_v38  ;;  %v2744_v51 = vld [vmem:[%s4632_s5 + $0xf8] sm:$0xff]  ;;  %v2743_v31 = vld [vmem:[%s4632_s5 + $0xf0] sm:$0xff] }
  0xef   :  { %v813_v45 = vadd.f32 %v812_v40, %v3982_v61  ;;  %v814_v46 = vpop.f32.mrb[9].mxu0  ;;  %v1562_v52 = vpack.c.bf16 %v1374_v48, %v1372_v47  ;;  %v3043_v47 = vld [vmem:[#allocation2] sm:$0x1] }
  0xf0   :  { %v815_v50 = vadd.f32 %v814_v46, %v3982_v61  ;;  %v816_v56 = vpop.f32.mrb[10].mxu0  ;;  %v1653_v61 = vld [vmem:[%s4631_s4 + $0xf0] sm:$0xff]  ;;  %v4210_v40 = vpop.permute.xlu1 %308 }
  0xf1   :  { %v1247_v58 = vmul.f32 0.2, %v813_v45  ;;  %v817_v59 = vadd.f32 %v816_v56, %v3986_v62  ;;  %v818_v60 = vpop.f32.mrb[11].mxu0  ;;  %2137 = vmatprep.subr.bf16.mxu0 %v1562_v52  ;;  %3225 = vmatprep.subr.bf16.mxu1 %v1562_v52  ;;  %vm1119_vm9 = vcmp.gt.f32.partialorder %v813_v45, 0.0 }
  0xf2   :  { %2882 = vperm.xlu1 %3387, %v2740_v35   ;;  %1802 = vperm.xlu0 %3386, %v1652_v36   ;;  %v1248_v1 = vmul.f32 0.2, %v815_v50  ;;  %v819_v54 = vadd.f32 %v818_v60, %v3986_v62  ;;  %vm1120_vm10 = vcmp.gt.f32.partialorder %v815_v50, 0.0 }
  0xf3   :  { %2138 = vmatpush1.bf16.msra.mxu0 %v1561_v44  ;;  %3241 = vmatpush1.bf16.msra.mxu1 %v1561_v44  ;;  %vm1121_vm11 = vcmp.gt.f32.partialorder %v817_v59, 0.0  ;;  %v1249_v2 = vmul.f32 0.2, %v817_v59  ;;  %v1375_v62 = vsel %vm1119_vm9, %v813_v45, %v1247_v58 }
  0xf4   :  { %3157 = vmatmul.mubr.msk.bf16.gmra.mrb[116].mxu0 %vm661_vm0, %v3423_v42  ;;  %vm1122_vm12 = vcmp.gt.f32.partialorder %v819_v54, 0.0  ;;  %v1250_v8 = vmul.f32 0.2, %v819_v54  ;;  %v1376_v23 = vsel %vm1120_vm10, %v815_v50, %v1248_v1 }
  0xf5   :  { %v1377_v10 = vsel %vm1121_vm11, %v817_v59, %v1249_v2  ;;  %1090 = vmatprep.mubr.bf16.mxu0 %v3530_v0  ;;  %v3425_v59 = vld [vmem:[%s4629_s1 + $0xf8] sm:$0xff]  }
  0xf6   :  { %2887 = vperm.xlu1 %3387, %v2741_v49   ;;  %1807 = vperm.xlu0 %3386, %v1653_v61   ;;  %v822_v12 = vpop.f32.mrb[12].mxu0  ;;  %v1563_v16 = vpack.c.bf16 %v1377_v10, %v1375_v62  ;;  %v1378_v24 = vsel %vm1122_vm12, %v819_v54, %v1250_v8 }
  0xf7   :  { %v823_v18 = vadd.f32 %v822_v12, %v3997_v3  ;;  %v824_v20 = vpop.f32.mrb[13].mxu0  ;;  %v1564_v27 = vpack.c.bf16 %v1378_v24, %v1376_v23 }
  0xf8   :  { %v825_v25 = vadd.f32 %v824_v20, %v3997_v3  ;;  %v826_v30 = vpop.f32.mrb[14].mxu0  ;;  %v4206_v3 = vpop.permute.xlu0 %303 }
  0xf9   :  { %vm1123_vm13 = vcmp.gt.f32.partialorder %v823_v18, 0.0  ;;  %v1251_v33 = vmul.f32 0.2, %v823_v18  ;;  %v827_v35 = vadd.f32 %v826_v30, %v4005_v6  ;;  %v828_v36 = vpop.f32.mrb[15].mxu0  ;;  %2139 = vmatprep.subr.bf16.mxu0 %v1564_v27  ;;  %3226 = vmatprep.subr.bf16.mxu1 %v1564_v27 }
  0xfa   :  { %2892 = vperm.xlu1 %3387, %v2742_v4   ;;  %1812 = vperm.xlu0 %3386, %v1654_v5   ;;  %vm1124_vm14 = vcmp.gt.f32.partialorder %v825_v25, 0.0  ;;  %v1252_v38 = vmul.f32 0.2, %v825_v25  ;;  %v829_v57 = vadd.f32 %v828_v36, %v4005_v6 }
  0xfb   :  { %2140 = vmatpush1.bf16.msra.mxu0 %v1563_v16  ;;  %3242 = vmatpush1.bf16.msra.mxu1 %v1563_v16  ;;  %vm1125_vm15 = vcmp.gt.f32.partialorder %v827_v35, 0.0  ;;  %v1253_v39 = vmul.f32 0.2, %v827_v35  ;;  %v1379_v44 = vsel %vm1123_vm13, %v823_v18, %v1251_v33 }
  0xfc   :  { %3158 = vmatmul.mubr.msk.bf16.gmra.mrb[120].mxu0 %vm661_vm0, %v3424_v13  ;;  %vm1126_vm1 = vcmp.gt.f32.partialorder %v829_v57, 0.0  ;;  %v1254_v42 = vmul.f32 0.2, %v829_v57  ;;  %v1380_v52 = vsel %vm1124_vm14, %v825_v25, %v1252_v38  ;;  %v4220_v60 = vpop.permute.xlu0 %313 }
  0xfd   :  { %v1381_v45 = vsel %vm1125_vm15, %v827_v35, %v1253_v39  ;;  %1100 = vmatprep.mubr.bf16.mxu0 %v3530_v0  ;;  %v3428_v0 = vld [vmem:[%s4633_s3 + $0x4] ss:$16 sps:$4 sm:$0xff]  }
  0xfe   :  { %2902 = vperm.xlu1 %3387, %v2744_v51   ;;  %2897 = vperm.xlu0 %3386, %v2743_v31   ;;  %v832_v46 = vpop.f32.mrb[16].mxu0  ;;  %v1565_v6 = vpack.c.bf16 %v1381_v45, %v1379_v44  ;;  %v1382_v56 = vsel %vm1126_vm1, %v829_v57, %v1254_v42 }
  0xff   :  { %v833_v48 = vadd.f32 %v832_v46, %v4015_v9  ;;  %v834_v50 = vpop.f32.mrb[17].mxu0  ;;  %v1566_v58 = vpack.c.bf16 %v1382_v56, %v1380_v52 }
 0x100   :  { %v835_v49 = vadd.f32 %v834_v50, %v4015_v9  ;;  %v836_v61 = vpop.f32.mrb[18].mxu0 }
 0x101   :  { %v1255_v1 = vmul.f32 0.2, %v833_v48  ;;  %v837_v54 = vadd.f32 %v836_v61, %v4020_v11  ;;  %v838_v2 = vpop.f32.mrb[19].mxu0  ;;  %2141 = vmatprep.subr.bf16.mxu0 %v1566_v58  ;;  %3227 = vmatprep.subr.bf16.mxu1 %v1566_v58  ;;  %vm1127_vm2 = vcmp.gt.f32.partialorder %v833_v48, 0.0 }
 0x102   :  { %3046 = vperm.xlu0 %3386, %v3043_v47   ;;  %v1256_v9 = vmul.f32 0.2, %v835_v49  ;;  %v839_v4 = vadd.f32 %v838_v2, %v4020_v11  ;;  %2142 = vmatpush1.bf16.msra.mxu0 %v1565_v6  ;;  %vm1128_vm3 = vcmp.gt.f32.partialorder %v835_v49, 0.0 }
 0x103   :  { %3243 = vmatpush1.bf16.msra.mxu1 %v1565_v6  ;;  %vm1129_vm4 = vcmp.gt.f32.partialorder %v837_v54, 0.0  ;;  %v1257_v5 = vmul.f32 0.2, %v837_v54  ;;  %v1383_v62 = vsel %vm1127_vm2, %v833_v48, %v1255_v1 }
 0x104   :  { %3159 = vmatmul.mubr.msk.bf16.gmra.mrb[124].mxu0 %vm661_vm0, %v3425_v59  ;;  %vm1130_vm5 = vcmp.gt.f32.partialorder %v839_v4, 0.0  ;;  %v1258_v8 = vmul.f32 0.2, %v839_v4  ;;  %v1384_v20 = vsel %vm1128_vm3, %v835_v49, %v1256_v9 }
 0x105   :  { %2167 = vmatprep.mubr.bf16.mxu0 %v3428_v0  ;;  %v1385_v10 = vsel %vm1129_vm4, %v837_v54, %v1257_v5 }
 0x106   :  { %v842_v12 = vpop.f32.mrb[20].mxu0  ;;  %v1567_v13 = vpack.c.bf16 %v1385_v10, %v1383_v62  ;;  %v1386_v23 = vsel %vm1130_vm5, %v839_v4, %v1258_v8 }
 0x107   :  { %v843_v16 = vadd.f32 %v842_v12, %v4030_v14  ;;  %v844_v18 = vpop.f32.mrb[21].mxu0  ;;  %v1568_v24 = vpack.c.bf16 %v1386_v23, %v1384_v20 }
 0x108   :  { %v845_v11 = vadd.f32 %v844_v18, %v4030_v14  ;;  %v846_v25 = vpop.f32.mrb[22].mxu0 }
 0x109   :  { %v1259_v27 = vmul.f32 0.2, %v843_v16  ;;  %v847_v51 = vadd.f32 %v846_v25, %v4038_v17  ;;  %v848_v30 = vpop.f32.mrb[23].mxu0  ;;  %2143 = vmatprep.subr.bf16.mxu0 %v1568_v24  ;;  %3228 = vmatprep.subr.bf16.mxu1 %v1568_v24  ;;  %vm1131_vm0 = vcmp.gt.f32.partialorder %v843_v16, 0.0 }
 0x10a   :  { %v1260_v31 = vmul.f32 0.2, %v845_v11  ;;  %v849_v33 = vadd.f32 %v848_v30, %v4038_v17  ;;  %2144 = vmatpush1.bf16.msra.mxu0 %v1567_v13  ;;  %3244 = vmatpush1.bf16.msra.mxu1 %v1567_v13  ;;  %vm1132_vm6 = vcmp.gt.f32.partialorder %v845_v11, 0.0 }
 0x10b   :  { %vm1133_vm7 = vcmp.gt.f32.partialorder %v847_v51, 0.0  ;;  %v1261_v35 = vmul.f32 0.2, %v847_v51  ;;  %v1387_v14 = vsel %vm1131_vm0, %v843_v16, %v1259_v27 }
 0x10c   :  { %vm1134_vm8 = vcmp.gt.f32.partialorder %v849_v33, 0.0  ;;  %v1262_v36 = vmul.f32 0.2, %v849_v33  ;;  %v1388_v45 = vsel %vm1132_vm6, %v845_v11, %v1260_v31 }
 0x10d   :  { %v1389_v38 = vsel %vm1133_vm7, %v847_v51, %v1261_v35 }
 0x10e   :  { %v852_v57 = vpop.f32.mrb[24].mxu0  ;;  %v1569_v39 = vpack.c.bf16 %v1389_v38, %v1387_v14  ;;  %v1390_v46 = vsel %vm1134_vm8, %v849_v33, %v1262_v36 }
 0x10f   :  { %v853_v42 = vadd.f32 %v852_v57, %v4049_v21  ;;  %v854_v44 = vpop.f32.mrb[25].mxu0  ;;  %v1570_v6 = vpack.c.bf16 %v1390_v46, %v1388_v45 }
 0x110   :  { %v855_v47 = vadd.f32 %v854_v44, %v4049_v21  ;;  %v856_v17 = vpop.f32.mrb[26].mxu0 }
 0x111   :  { %v1263_v48 = vmul.f32 0.2, %v853_v42  ;;  %v857_v50 = vadd.f32 %v856_v17, %v4053_v22  ;;  %v858_v52 = vpop.f32.mrb[27].mxu0  ;;  %2145 = vmatprep.subr.bf16.mxu0 %v1570_v6  ;;  %3229 = vmatprep.subr.bf16.mxu1 %v1570_v6  ;;  %vm1135_vm9 = vcmp.gt.f32.partialorder %v853_v42, 0.0 }
 0x112   :  { %v1264_v56 = vmul.f32 0.2, %v855_v47  ;;  %v859_v49 = vadd.f32 %v858_v52, %v4053_v22  ;;  %2146 = vmatpush1.bf16.msra.mxu0 %v1569_v39  ;;  %3245 = vmatpush1.bf16.msra.mxu1 %v1569_v39  ;;  %vm1136_vm10 = vcmp.gt.f32.partialorder %v855_v47, 0.0 }
 0x113   :  { %vm1137_vm11 = vcmp.gt.f32.partialorder %v857_v50, 0.0  ;;  %v1265_v58 = vmul.f32 0.2, %v857_v50  ;;  %v1391_v21 = vsel %vm1135_vm9, %v853_v42, %v1263_v48 }
 0x114   :  { %vm1138_vm12 = vcmp.gt.f32.partialorder %v859_v49, 0.0  ;;  %v1266_v59 = vmul.f32 0.2, %v859_v49  ;;  %v1392_v9 = vsel %vm1136_vm10, %v855_v47, %v1264_v56 }
 0x115   :  { %v1393_v61 = vsel %vm1137_vm11, %v857_v50, %v1265_v58 }
 0x116   :  { %v862_v0 = vpop.f32.mrb[28].mxu0  ;;  %v1571_v1 = vpack.c.bf16 %v1393_v61, %v1391_v21  ;;  %v1394_v4 = vsel %vm1138_vm12, %v859_v49, %v1266_v59 }
 0x117   :  { %v863_v54 = vadd.f32 %v862_v0, %v4064_v26  ;;  %v864_v2 = vpop.f32.mrb[29].mxu0  ;;  %v1572_v8 = vpack.c.bf16 %v1394_v4, %v1392_v9 }
 0x118   :  { %v865_v5 = vadd.f32 %v864_v2, %v4064_v26  ;;  %v866_v22 = vpop.f32.mrb[30].mxu0 }
 0x119   :  { %v1267_v62 = vmul.f32 0.2, %v863_v54  ;;  %v867_v10 = vadd.f32 %v866_v22, %v4072_v29  ;;  %v868_v12 = vpop.f32.mrb[31].mxu0  ;;  %2147 = vmatprep.subr.bf16.mxu0 %v1572_v8  ;;  %3230 = vmatprep.subr.bf16.mxu1 %v1572_v8  ;;  %vm1139_vm13 = vcmp.gt.f32.partialorder %v863_v54, 0.0 }
 0x11a   :  { %v1268_v13 = vmul.f32 0.2, %v865_v5  ;;  %v869_v16 = vadd.f32 %v868_v12, %v4072_v29  ;;  %2148 = vmatpush1.bf16.msra.mxu0 %v1571_v1  ;;  %3246 = vmatpush1.bf16.msra.mxu1 %v1571_v1  ;;  %vm1140_vm14 = vcmp.gt.f32.partialorder %v865_v5, 0.0 }
 0x11b   :  { %vm1141_vm15 = vcmp.gt.f32.partialorder %v867_v10, 0.0  ;;  %v1269_v18 = vmul.f32 0.2, %v867_v10  ;;  %v1395_v26 = vsel %vm1139_vm13, %v863_v54, %v1267_v62 }
 0x11c   :  { %vm1142_vm1 = vcmp.gt.f32.partialorder %v869_v16, 0.0  ;;  %v1270_v20 = vmul.f32 0.2, %v869_v16  ;;  %v1396_v51 = vsel %vm1140_vm14, %v865_v5, %v1268_v13 }
 0x11d   :  { %v1397_v23 = vsel %vm1141_vm15, %v867_v10, %v1269_v18 }
 0x11e   :  { %v872_v11 = vpop.f32.mrb[32].mxu0  ;;  %v1573_v24 = vpack.c.bf16 %v1397_v23, %v1395_v26  ;;  %v1398_v30 = vsel %vm1142_vm1, %v869_v16, %v1270_v20 }
 0x11f   :  { %v873_v25 = vadd.f32 %v872_v11, %v4082_v32  ;;  %v874_v27 = vpop.f32.mrb[33].mxu0  ;;  %v1574_v33 = vpack.c.bf16 %v1398_v30, %v1396_v51 }
 0x120   :  { %v875_v31 = vadd.f32 %v874_v27, %v4082_v32  ;;  %v876_v29 = vpop.f32.mrb[34].mxu0 }
 0x121   :  { %v1271_v35 = vmul.f32 0.2, %v873_v25  ;;  %v877_v36 = vadd.f32 %v876_v29, %v4087_v34  ;;  %v878_v14 = vpop.f32.mrb[35].mxu0  ;;  %2149 = vmatprep.subr.bf16.mxu0 %v1574_v33  ;;  %3231 = vmatprep.subr.bf16.mxu1 %v1574_v33  ;;  %vm1143_vm2 = vcmp.gt.f32.partialorder %v873_v25, 0.0 }
 0x122   :  { %v1272_v38 = vmul.f32 0.2, %v875_v31  ;;  %v879_v57 = vadd.f32 %v878_v14, %v4087_v34  ;;  %2150 = vmatpush1.bf16.msra.mxu0 %v1573_v24  ;;  %3247 = vmatpush1.bf16.msra.mxu1 %v1573_v24  ;;  %vm1144_vm3 = vcmp.gt.f32.partialorder %v875_v31, 0.0 }
 0x123   :  { %vm1145_vm4 = vcmp.gt.f32.partialorder %v877_v36, 0.0  ;;  %v1273_v39 = vmul.f32 0.2, %v877_v36  ;;  %v1399_v32 = vsel %vm1143_vm2, %v873_v25, %v1271_v35 }
 0x124   :  { %vm1146_vm5 = vcmp.gt.f32.partialorder %v879_v57, 0.0  ;;  %v1274_v42 = vmul.f32 0.2, %v879_v57  ;;  %v1400_v17 = vsel %vm1144_vm3, %v875_v31, %v1272_v38 }
 0x125   :  { %v1401_v44 = vsel %vm1145_vm4, %v877_v36, %v1273_v39 }
 0x126   :  { %v882_v45 = vpop.f32.mrb[36].mxu0  ;;  %v1575_v46 = vpack.c.bf16 %v1401_v44, %v1399_v32  ;;  %v1402_v48 = vsel %vm1146_vm5, %v879_v57, %v1274_v42 }
 0x127   :  { %v883_v47 = vadd.f32 %v882_v45, %v4097_v37  ;;  %v884_v6 = vpop.f32.mrb[37].mxu0  ;;  %v1576_v52 = vpack.c.bf16 %v1402_v48, %v1400_v17 }
 0x128   :  { %v885_v50 = vadd.f32 %v884_v6, %v4097_v37  ;;  %v886_v34 = vpop.f32.mrb[38].mxu0 }
 0x129   :  { %v1275_v56 = vmul.f32 0.2, %v883_v47  ;;  %v887_v49 = vadd.f32 %v886_v34, %v4105_v41  ;;  %v888_v58 = vpop.f32.mrb[39].mxu0  ;;  %2151 = vmatprep.subr.bf16.mxu0 %v1576_v52  ;;  %3232 = vmatprep.subr.bf16.mxu1 %v1576_v52  ;;  %vm1147_vm0 = vcmp.gt.f32.partialorder %v883_v47, 0.0 }
 0x12a   :  { %v1276_v59 = vmul.f32 0.2, %v885_v50  ;;  %v889_v21 = vadd.f32 %v888_v58, %v4105_v41  ;;  %2152 = vmatpush1.bf16.msra.mxu0 %v1575_v46  ;;  %3248 = vmatpush1.bf16.msra.mxu1 %v1575_v46  ;;  %vm1148_vm6 = vcmp.gt.f32.partialorder %v885_v50, 0.0 }
 0x12b   :  { %vm1149_vm7 = vcmp.gt.f32.partialorder %v887_v49, 0.0  ;;  %v1277_v61 = vmul.f32 0.2, %v887_v49  ;;  %v1403_v37 = vsel %vm1147_vm0, %v883_v47, %v1275_v56 }
 0x12c   :  { %vm1150_vm8 = vcmp.gt.f32.partialorder %v889_v21, 0.0  ;;  %v1278_v0 = vmul.f32 0.2, %v889_v21  ;;  %v1404_v5 = vsel %vm1148_vm6, %v885_v50, %v1276_v59 }
 0x12d   :  { %v1405_v1 = vsel %vm1149_vm7, %v887_v49, %v1277_v61 }
 0x12e   :  { %v892_v54 = vpop.f32.mrb[40].mxu0  ;;  %v1577_v2 = vpack.c.bf16 %v1405_v1, %v1403_v37  ;;  %v1406_v8 = vsel %vm1150_vm8, %v889_v21, %v1278_v0 }
 0x12f   :  { %v893_v9 = vadd.f32 %v892_v54, %v4119_v55  ;;  %v894_v4 = vpop.f32.mrb[41].mxu0  ;;  %v1578_v62 = vpack.c.bf16 %v1406_v8, %v1404_v5 }
 0x130   :  { %v895_v22 = vadd.f32 %v894_v4, %v4119_v55  ;;  %v896_v41 = vpop.f32.mrb[42].mxu0 }
 0x131   :  { %v1279_v10 = vmul.f32 0.2, %v893_v9  ;;  %v897_v12 = vadd.f32 %v896_v41, %v4130_v63  ;;  %v898_v13 = vpop.f32.mrb[43].mxu0  ;;  %2153 = vmatprep.subr.bf16.mxu0 %v1578_v62  ;;  %3233 = vmatprep.subr.bf16.mxu1 %v1578_v62  ;;  %vm1151_vm9 = vcmp.gt.f32.partialorder %v893_v9, 0.0 }
 0x132   :  { %v1280_v16 = vmul.f32 0.2, %v895_v22  ;;  %v899_v18 = vadd.f32 %v898_v13, %v4130_v63  ;;  %2154 = vmatpush1.bf16.msra.mxu0 %v1577_v2  ;;  %3249 = vmatpush1.bf16.msra.mxu1 %v1577_v2  ;;  %vm1152_vm10 = vcmp.gt.f32.partialorder %v895_v22, 0.0 }
 0x133   :  { %vm1153_vm11 = vcmp.gt.f32.partialorder %v897_v12, 0.0  ;;  %v1281_v20 = vmul.f32 0.2, %v897_v12  ;;  %v1407_v55 = vsel %vm1151_vm9, %v893_v9, %v1279_v10 }
 0x134   :  { %vm1154_vm12 = vcmp.gt.f32.partialorder %v899_v18, 0.0  ;;  %v1282_v26 = vmul.f32 0.2, %v899_v18  ;;  %v1408_v51 = vsel %vm1152_vm10, %v895_v22, %v1280_v16 }
 0x135   :  { %v1409_v23 = vsel %vm1153_vm11, %v897_v12, %v1281_v20 }
 0x136   :  { %v902_v11 = vpop.f32.mrb[44].mxu0  ;;  %v1579_v24 = vpack.c.bf16 %v1409_v23, %v1407_v55  ;;  %v1410_v30 = vsel %vm1154_vm12, %v899_v18, %v1282_v26 }
 0x137   :  { %v903_v25 = vadd.f32 %v902_v11, %v4141_v19  ;;  %v904_v27 = vpop.f32.mrb[45].mxu0  ;;  %v1580_v33 = vpack.c.bf16 %v1410_v30, %v1408_v51 }
 0x138   :  { %v905_v31 = vadd.f32 %v904_v27, %v4141_v19  ;;  %v906_v63 = vpop.f32.mrb[46].mxu0 }
 0x139   :  { %v1283_v29 = vmul.f32 0.2, %v903_v25  ;;  %v907_v35 = vadd.f32 %v906_v63, %v4150_v28  ;;  %v908_v36 = vpop.f32.mrb[47].mxu0  ;;  %2155 = vmatprep.subr.bf16.mxu0 %v1580_v33  ;;  %3234 = vmatprep.subr.bf16.mxu1 %v1580_v33  ;;  %vm1155_vm13 = vcmp.gt.f32.partialorder %v903_v25, 0.0 }
 0x13a   :  { %v1284_v14 = vmul.f32 0.2, %v905_v31  ;;  %v909_v38 = vadd.f32 %v908_v36, %v4150_v28  ;;  %2156 = vmatpush1.bf16.msra.mxu0 %v1579_v24  ;;  %3250 = vmatpush1.bf16.msra.mxu1 %v1579_v24  ;;  %vm1156_vm14 = vcmp.gt.f32.partialorder %v905_v31, 0.0 }
 0x13b   :  { %vm1157_vm15 = vcmp.gt.f32.partialorder %v907_v35, 0.0  ;;  %v1285_v57 = vmul.f32 0.2, %v907_v35  ;;  %v1411_v19 = vsel %vm1155_vm13, %v903_v25, %v1283_v29 }
 0x13c   :  { %vm1158_vm1 = vcmp.gt.f32.partialorder %v909_v38, 0.0  ;;  %v1286_v39 = vmul.f32 0.2, %v909_v38  ;;  %v1412_v47 = vsel %vm1156_vm14, %v905_v31, %v1284_v14 }
 0x13d   :  { %v1413_v42 = vsel %vm1157_vm15, %v907_v35, %v1285_v57 }
 0x13e   :  { %v912_v32 = vpop.f32.mrb[48].mxu0  ;;  %v1581_v44 = vpack.c.bf16 %v1413_v42, %v1411_v19  ;;  %v1414_v6 = vsel %vm1158_vm1, %v909_v38, %v1286_v39 }
 0x13f   :  { %v913_v45 = vadd.f32 %v912_v32, %v4165_v43  ;;  %v914_v46 = vpop.f32.mrb[49].mxu0  ;;  %v1582_v48 = vpack.c.bf16 %v1414_v6, %v1412_v47 }
 0x140   :  { %v915_v17 = vadd.f32 %v914_v46, %v4165_v43  ;;  %v916_v28 = vpop.f32.mrb[50].mxu0 }
 0x141   :  { %v1287_v50 = vmul.f32 0.2, %v913_v45  ;;  %v917_v52 = vadd.f32 %v916_v28, %v4170_v53  ;;  %v918_v34 = vpop.f32.mrb[51].mxu0  ;;  %2157 = vmatprep.subr.bf16.mxu0 %v1582_v48  ;;  %3235 = vmatprep.subr.bf16.mxu1 %v1582_v48  ;;  %vm1159_vm2 = vcmp.gt.f32.partialorder %v913_v45, 0.0  ;;  %v324_v28 = vpop.permute.xlu0 %323 }
 0x142   :  { %v1288_v56 = vmul.f32 0.2, %v915_v17  ;;  %v919_v49 = vadd.f32 %v918_v34, %v4170_v53  ;;  %2158 = vmatpush1.bf16.msra.mxu0 %v1581_v44  ;;  %3251 = vmatpush1.bf16.msra.mxu1 %v1581_v44  ;;  %vm1160_vm3 = vcmp.gt.f32.partialorder %v915_v17, 0.0 }
 0x143   :  { %vm1161_vm4 = vcmp.gt.f32.partialorder %v917_v52, 0.0  ;;  %v1289_v58 = vmul.f32 0.2, %v917_v52  ;;  %v1415_v43 = vsel %vm1159_vm2, %v913_v45, %v1287_v50 }
 0x144   :  { %vm1162_vm5 = vcmp.gt.f32.partialorder %v919_v49, 0.0  ;;  %v1290_v59 = vmul.f32 0.2, %v919_v49  ;;  %v1416_v54 = vsel %vm1160_vm3, %v915_v17, %v1288_v56 }
 0x145   :  { %v1417_v21 = vsel %vm1161_vm4, %v917_v52, %v1289_v58 }
 0x146   :  { %v922_v61 = vpop.f32.mrb[52].mxu0  ;;  %v1583_v0 = vpack.c.bf16 %v1417_v21, %v1415_v43  ;;  %v1418_v2 = vsel %vm1162_vm5, %v919_v49, %v1290_v59 }
 0x147   :  { %v923_v37 = vadd.f32 %v922_v61, %v4187_v7  ;;  %v924_v1 = vpop.f32.mrb[53].mxu0  ;;  %v1584_v4 = vpack.c.bf16 %v1418_v2, %v1416_v54 }
 0x148   :  { %v925_v9 = vadd.f32 %v924_v1, %v4187_v7  ;;  %v926_v53 = vpop.f32.mrb[54].mxu0  ;;  %v3429_v1 = vld [vmem:[%s4633_s3 + $0x60] ss:$16 sps:$4 sm:$0xff]  }
 0x149   :  { %v1291_v5 = vmul.f32 0.2, %v923_v37  ;;  %v927_v8 = vadd.f32 %v926_v53, %v4194_v15  ;;  %v928_v22 = vpop.f32.mrb[55].mxu0  ;;  %2159 = vmatprep.subr.bf16.mxu0 %v1584_v4  ;;  %3236 = vmatprep.subr.bf16.mxu1 %v1584_v4  ;;  %vm1163_vm0 = vcmp.gt.f32.partialorder %v923_v37, 0.0 }
 0x14a   :  { %v1292_v62 = vmul.f32 0.2, %v925_v9  ;;  %v929_v41 = vadd.f32 %v928_v22, %v4194_v15  ;;  %2160 = vmatpush1.bf16.msra.mxu0 %v1583_v0  ;;  %3252 = vmatpush1.bf16.msra.mxu1 %v1583_v0  ;;  %vm1164_vm6 = vcmp.gt.f32.partialorder %v925_v9, 0.0 }
 0x14b   :  { %vm1165_vm7 = vcmp.gt.f32.partialorder %v927_v8, 0.0  ;;  %v1293_v10 = vmul.f32 0.2, %v927_v8  ;;  %v1419_v7 = vsel %vm1163_vm0, %v923_v37, %v1291_v5  ;;  %v3426_v37 = vld [vmem:[%s4633_s3] ss:$16 sps:$4 sm:$0xff]  }
 0x14c   :  { %vm1166_vm8 = vcmp.gt.f32.partialorder %v929_v41, 0.0  ;;  %v1294_v12 = vmul.f32 0.2, %v929_v41  ;;  %v1420_v55 = vsel %vm1164_vm6, %v925_v9, %v1292_v62  ;;  %v3432_v5 = vld [vmem:[%s4633_s3 + $0x24] ss:$16 sps:$4 sm:$0xff]  }
 0x14d   :  { %v1421_v13 = vsel %vm1165_vm7, %v927_v8, %v1293_v10  ;;  %v3438_v8 = vld [vmem:[%s4633_s3 + $0x84] ss:$16 sps:$4 sm:$0xff]  }
 0x14e   :  { %v932_v16 = vpop.f32.mrb[56].mxu0  ;;  %v1585_v18 = vpack.c.bf16 %v1421_v13, %v1419_v7  ;;  %v1422_v23 = vsel %vm1166_vm8, %v929_v41, %v1294_v12  ;;  %v334_v41 = vpop.permute.xlu0 %333 }
 0x14f   :  { %v933_v20 = vadd.f32 %v932_v16, %v4206_v3  ;;  %v934_v26 = vpop.f32.mrb[57].mxu0  ;;  %v1586_v24 = vpack.c.bf16 %v1422_v23, %v1420_v55 }
 0x150   :  { %v935_v11 = vadd.f32 %v934_v26, %v4206_v3  ;;  %v936_v15 = vpop.f32.mrb[58].mxu0 }
 0x151   :  { %v1295_v25 = vmul.f32 0.2, %v933_v20  ;;  %v937_v27 = vadd.f32 %v936_v15, %v4210_v40  ;;  %v938_v51 = vpop.f32.mrb[59].mxu0  ;;  %2161 = vmatprep.subr.bf16.mxu0 %v1586_v24  ;;  %3237 = vmatprep.subr.bf16.mxu1 %v1586_v24  ;;  %vm1167_vm9 = vcmp.gt.f32.partialorder %v933_v20, 0.0  ;;  %v3434_v15 = vld [vmem:[%s4633_s3 + $0x20] ss:$16 sps:$4 sm:$0xff]  }
 0x152   :  { %v1296_v30 = vmul.f32 0.2, %v935_v11  ;;  %v939_v31 = vadd.f32 %v938_v51, %v4210_v40  ;;  %2162 = vmatpush1.bf16.msra.mxu0 %v1585_v18  ;;  %3253 = vmatpush1.bf16.msra.mxu1 %v1585_v18  ;;  %vm1168_vm10 = vcmp.gt.f32.partialorder %v935_v11, 0.0  ;;  %v319_v40 = vpop.permute.xlu1 %318 }
 0x153   :  { %vm1169_vm11 = vcmp.gt.f32.partialorder %v937_v27, 0.0  ;;  %v1297_v33 = vmul.f32 0.2, %v937_v27  ;;  %v1423_v3 = vsel %vm1167_vm9, %v933_v20, %v1295_v25  ;;  %v3440_v25 = vld [vmem:[%s4633_s3 + $0x80] ss:$16 sps:$4 sm:$0xff]  }
 0x154   :  { %vm1170_vm12 = vcmp.gt.f32.partialorder %v939_v31, 0.0  ;;  %v1298_v63 = vmul.f32 0.2, %v939_v31  ;;  %v1424_v57 = vsel %vm1168_vm10, %v935_v11, %v1296_v30 }
 0x155   :  { %v1425_v29 = vsel %vm1169_vm11, %v937_v27, %v1297_v33 }
 0x156   :  { %v942_v35 = vpop.f32.mrb[60].mxu0  ;;  %v1587_v36 = vpack.c.bf16 %v1425_v29, %v1423_v3  ;;  %v1426_v39 = vsel %vm1170_vm12, %v939_v31, %v1298_v63  ;;  %v329_v61 = vpop.permute.xlu1 %328  ;;  %v3435_v63 = vld [vmem:[%s4633_s3 + $0x44] ss:$16 sps:$4 sm:$0xff]  }
 0x157   :  { %v943_v14 = vadd.f32 %v942_v35, %v4220_v60  ;;  %v944_v38 = vpop.f32.mrb[61].mxu0  ;;  %v1588_v42 = vpack.c.bf16 %v1426_v39, %v1424_v57  ;;  %v3441_v3 = vld [vmem:[%s4633_s3 + $0xa4] ss:$16 sps:$4 sm:$0xff]  }
 0x158   :  { %v945_v19 = vadd.f32 %v944_v38, %v4220_v60  ;;  %v946_v32 = vpop.f32.mrb[62].mxu0 }
 0x159   :  { %v1299_v44 = vmul.f32 0.2, %v943_v14  ;;  %v947_v45 = vadd.f32 %v946_v32, %v319_v40  ;;  %v948_v46 = vpop.f32.mrb[63].mxu0  ;;  %2163 = vmatprep.subr.bf16.mxu0 %v1588_v42  ;;  %3238 = vmatprep.subr.bf16.mxu1 %v1588_v42  ;;  %vm1171_vm13 = vcmp.gt.f32.partialorder %v943_v14, 0.0 }
 0x15a   :  { %v1300_v47 = vmul.f32 0.2, %v945_v19  ;;  %v949_v6 = vadd.f32 %v948_v46, %v319_v40  ;;  %2164 = vmatpush1.bf16.msra.mxu0 %v1587_v36  ;;  %3254 = vmatpush1.bf16.msra.mxu1 %v1587_v36  ;;  %vm1172_vm14 = vcmp.gt.f32.partialorder %v945_v19, 0.0  ;;  %v339_v11 = vpop.permute.xlu1 %338  ;;  %v344_v36 = vpop.permute.xlu0 %343 }
 0x15b   :  { %vm1173_vm15 = vcmp.gt.f32.partialorder %v947_v45, 0.0  ;;  %v1301_v17 = vmul.f32 0.2, %v947_v45  ;;  %v1427_v60 = vsel %vm1171_vm13, %v943_v14, %v1299_v44 }
 0x15c   :  { %vm1174_vm1 = vcmp.gt.f32.partialorder %v949_v6, 0.0  ;;  %v1302_v48 = vmul.f32 0.2, %v949_v6  ;;  %v1428_v58 = vsel %vm1172_vm14, %v945_v19, %v1300_v47 }
 0x15d   :  { %v1429_v50 = vsel %vm1173_vm15, %v947_v45, %v1301_v17 }
 0x15e   :  { %v952_v52 = vpop.f32.mrb[64].mxu0  ;;  %v1589_v34 = vpack.c.bf16 %v1429_v50, %v1427_v60  ;;  %v1430_v59 = vsel %vm1174_vm1, %v949_v6, %v1302_v48  ;;  %v349_v46 = vpop.permute.xlu1 %348  ;;  %v3437_v6 = vld [vmem:[%s4633_s3 + $0x40] ss:$16 sps:$4 sm:$0xff]  }
 0x15f   :  { %v953_v56 = vadd.f32 %v952_v52, %v324_v28  ;;  %v954_v49 = vpop.f32.mrb[65].mxu0  ;;  %v1590_v21 = vpack.c.bf16 %v1430_v59, %v1428_v58  ;;  %v3443_v60 = vld [vmem:[%s4633_s3 + $0xa0] ss:$16 sps:$4 sm:$0xff]   ;;  %v354_v58 = vpop.permute.xlu0 %353 }
 0x160   :  { %v955_v43 = vadd.f32 %v954_v49, %v324_v28  ;;  %v956_v0 = vpop.f32.mrb[66].mxu0 }
 0x161   :  { %v1303_v54 = vmul.f32 0.2, %v953_v56  ;;  %v957_v9 = vadd.f32 %v956_v0, %v329_v61  ;;  %v958_v4 = vpop.f32.mrb[67].mxu0  ;;  %2165 = vmatprep.subr.bf16.mxu0 %v1590_v21  ;;  %3239 = vmatprep.subr.bf16.mxu1 %v1590_v21  ;;  %vm1175_vm2 = vcmp.gt.f32.partialorder %v953_v56, 0.0 }
 0x162   :  { %v1304_v2 = vmul.f32 0.2, %v955_v43  ;;  %vm1176_vm3 = vcmp.gt.f32.partialorder %v955_v43, 0.0  ;;  %v959_v53 = vadd.f32 %v958_v4, %v329_v61  ;;  %2166 = vmatpush1.bf16.msra.mxu0 %v1589_v34  ;;  %3255 = vmatpush1.bf16.msra.mxu1 %v1589_v34  ;;  %v3444_v34 = vld [vmem:[%s4633_s3 + $0xc4] ss:$16 sps:$4 sm:$0xff]   ;;  %v359_v4 = vpop.permute.xlu1 %358 }
 0x163   :  { %vm1177_vm4 = vcmp.gt.f32.partialorder %v957_v9, 0.0  ;;  %v1305_v22 = vmul.f32 0.2, %v957_v9  ;;  %v1431_v10 = vsel %vm1175_vm2, %v953_v56, %v1303_v54 }
 0x164   :  { %vm1178_vm5 = vcmp.gt.f32.partialorder %v959_v53, 0.0  ;;  %v1306_v62 = vmul.f32 0.2, %v959_v53  ;;  %v1432_v13 = vsel %vm1176_vm3, %v955_v43, %v1304_v2 }
 0x165   :  { %v1433_v12 = vsel %vm1177_vm4, %v957_v9, %v1305_v22  ;;  %2168 = vmatmul.mubr.bf16.vlgmr.msra.gmra.mrb[128].mxu0 %v3426_v37  ;;  %2198 = vmatmul.mubr.bf16.vlgmr.msra.gmra.mrb[0].mxu1 %v3429_v1 }
 0x166   :  { %v962_v7 = vpop.f32.mrb[68].mxu0  ;;  %v1591_v16 = vpack.c.bf16 %v1433_v12, %v1431_v10  ;;  %v1434_v26 = vsel %vm1178_vm5, %v959_v53, %v1306_v62  ;;  %2177 = vmatprep.mubr.bf16.mxu0 %v3432_v5  ;;  %2207 = vmatprep.mubr.bf16.mxu1 %v3438_v8  ;;  %v3446_v62 = vld [vmem:[%s4633_s3 + $0xc0] ss:$16 sps:$4 sm:$0xff]   ;;  %v3447_v12 = vld [vmem:[%s4633_s3 + $0xe4] ss:$16 sps:$4 sm:$0xff]  }
 0x167   :  { %v963_v18 = vadd.f32 %v962_v7, %v334_v41  ;;  %v964_v20 = vpop.f32.mrb[69].mxu0  ;;  %v1592_v23 = vpack.c.bf16 %v1434_v26, %v1432_v13 }
 0x168   :  { %v965_v55 = vadd.f32 %v964_v20, %v334_v41  ;;  %v966_v24 = vpop.f32.mrb[70].mxu0 }
 0x169   :  { %v1307_v27 = vmul.f32 0.2, %v963_v18  ;;  %v967_v30 = vadd.f32 %v966_v24, %v339_v11  ;;  %v968_v31 = vpop.f32.mrb[71].mxu0  ;;  %2328 = vmatprep.subr.bf16.mxu1 %v1592_v23  ;;  %vm1179_vm0 = vcmp.gt.f32.partialorder %v963_v18, 0.0 }
 0x16a   :  { %v1308_v51 = vmul.f32 0.2, %v965_v55  ;;  %vm1180_vm6 = vcmp.gt.f32.partialorder %v965_v55, 0.0  ;;  %v969_v33 = vadd.f32 %v968_v31, %v339_v11  ;;  %2329 = vmatpush1.bf16.msra.mxu1 %v1591_v16  ;;  %v364_v16 = vpop.permute.xlu0 %363 }
 0x16b   :  { %vm1181_vm7 = vcmp.gt.f32.partialorder %v967_v30, 0.0  ;;  %v1309_v29 = vmul.f32 0.2, %v967_v30  ;;  %v1435_v14 = vsel %vm1179_vm0, %v963_v18, %v1307_v27 }
 0x16c   :  { %vm1182_vm8 = vcmp.gt.f32.partialorder %v969_v33, 0.0  ;;  %v1310_v35 = vmul.f32 0.2, %v969_v33  ;;  %v1436_v39 = vsel %vm1180_vm6, %v965_v55, %v1308_v51 }
 0x16d   :  { %v1437_v38 = vsel %vm1181_vm7, %v967_v30, %v1309_v29  ;;  %2178 = vmatmul.mubr.bf16.gmra.mrb[132].mxu0 %v3434_v15  ;;  %2208 = vmatmul.mubr.bf16.gmra.mrb[4].mxu1 %v3440_v25  ;;  %v369_v25 = vpop.permute.xlu1 %368 }
 0x16e   :  { %v972_v57 = vpop.f32.mrb[72].mxu0  ;;  %v1593_v19 = vpack.c.bf16 %v1437_v38, %v1435_v14  ;;  %v1438_v32 = vsel %vm1182_vm8, %v969_v33, %v1310_v35  ;;  %2187 = vmatprep.mubr.bf16.mxu0 %v3435_v63  ;;  %2217 = vmatprep.mubr.bf16.mxu1 %v3441_v3  ;;  %v3449_v35 = vld [vmem:[%s4633_s3 + $0xe0] ss:$16 sps:$4 sm:$0xff]   ;;  %v3450_v14 = vld [vmem:[%s4633_s3 + $0x104] ss:$16 sps:$4 sm:$0xff]  }
 0x16f   :  { %v973_v42 = vadd.f32 %v972_v57, %v344_v36  ;;  %v974_v40 = vpop.f32.mrb[73].mxu0  ;;  %v1594_v45 = vpack.c.bf16 %v1438_v32, %v1436_v39 }
 0x170   :  { %v975_v44 = vadd.f32 %v974_v40, %v344_v36  ;;  %v976_v47 = vpop.f32.mrb[74].mxu0 }
 0x171   :  { %v1311_v17 = vmul.f32 0.2, %v973_v42  ;;  %v977_v48 = vadd.f32 %v976_v47, %v349_v46  ;;  %v978_v28 = vpop.f32.mrb[75].mxu0  ;;  %2330 = vmatprep.subr.bf16.mxu1 %v1594_v45  ;;  %vm1183_vm9 = vcmp.gt.f32.partialorder %v973_v42, 0.0 }
 0x172   :  { %v1312_v50 = vmul.f32 0.2, %v975_v44  ;;  %v979_v52 = vadd.f32 %v978_v28, %v349_v46  ;;  %2331 = vmatpush1.bf16.msra.mxu1 %v1593_v19  ;;  %vm1184_vm10 = vcmp.gt.f32.partialorder %v975_v44, 0.0  ;;  %v374_v19 = vpop.permute.xlu0 %373 }
 0x173   :  { %vm1185_vm11 = vcmp.gt.f32.partialorder %v977_v48, 0.0  ;;  %v1313_v56 = vmul.f32 0.2, %v977_v48  ;;  %v1439_v59 = vsel %vm1183_vm9, %v973_v42, %v1311_v17 }
 0x174   :  { %vm1186_vm12 = vcmp.gt.f32.partialorder %v979_v52, 0.0  ;;  %v1314_v49 = vmul.f32 0.2, %v979_v52  ;;  %v1440_v1 = vsel %vm1184_vm10, %v975_v44, %v1312_v50 }
 0x175   :  { %v1441_v43 = vsel %vm1185_vm11, %v977_v48, %v1313_v56  ;;  %2188 = vmatmul.mubr.bf16.gmra.mrb[136].mxu0 %v3437_v6  ;;  %2218 = vmatmul.mubr.bf16.gmra.mrb[8].mxu1 %v3443_v60  ;;  %v379_v6 = vpop.permute.xlu1 %378  ;;  %v3452_v56 = vld [vmem:[%s4633_s3 + $0x100] ss:$16 sps:$4 sm:$0xff]  }
 0x176   :  { %v982_v21 = vpop.f32.mrb[76].mxu0  ;;  %v1595_v61 = vpack.c.bf16 %v1441_v43, %v1439_v59  ;;  %v1442_v54 = vsel %vm1186_vm12, %v979_v52, %v1314_v49  ;;  %2227 = vmatprep.mubr.bf16.mxu1 %v3444_v34 }
 0x177   :  { %v983_v0 = vadd.f32 %v982_v21, %v354_v58  ;;  %v984_v37 = vpop.f32.mrb[77].mxu0  ;;  %v1596_v9 = vpack.c.bf16 %v1442_v54, %v1440_v1 }
 0x178   :  { %v985_v2 = vadd.f32 %v984_v37, %v354_v58  ;;  %v986_v53 = vpop.f32.mrb[78].mxu0  ;;  %v3453_v58 = vld [vmem:[%s4633_s3 + $0x124] ss:$16 sps:$4 sm:$0xff]  }
 0x179   :  { %v1315_v5 = vmul.f32 0.2, %v983_v0  ;;  %v987_v8 = vadd.f32 %v986_v53, %v359_v4  ;;  %v988_v22 = vpop.f32.mrb[79].mxu0  ;;  %2332 = vmatprep.subr.bf16.mxu1 %v1596_v9  ;;  %vm1187_vm13 = vcmp.gt.f32.partialorder %v983_v0, 0.0  ;;  %v389_v53 = vpop.permute.xlu1 %388 }
 0x17a   :  { %v1316_v41 = vmul.f32 0.2, %v985_v2  ;;  %v989_v10 = vadd.f32 %v988_v22, %v359_v4  ;;  %2333 = vmatpush1.bf16.msra.mxu1 %v1595_v61  ;;  %vm1188_vm14 = vcmp.gt.f32.partialorder %v985_v2, 0.0  ;;  %v384_v61 = vpop.permute.xlu0 %383 }
 0x17b   :  { %vm1189_vm15 = vcmp.gt.f32.partialorder %v987_v8, 0.0  ;;  %v1317_v7 = vmul.f32 0.2, %v987_v8  ;;  %v1443_v18 = vsel %vm1187_vm13, %v983_v0, %v1315_v5 }
 0x17c   :  { %vm1190_vm1 = vcmp.gt.f32.partialorder %v989_v10, 0.0  ;;  %v1318_v13 = vmul.f32 0.2, %v989_v10  ;;  %v1444_v24 = vsel %vm1188_vm14, %v985_v2, %v1316_v41 }
 0x17d   :  { %v1445_v20 = vsel %vm1189_vm15, %v987_v8, %v1317_v7  ;;  %2228 = vmatmul.mubr.bf16.gmra.mrb[12].mxu1 %v3446_v62  ;;  %v3455_v7 = vld [vmem:[%s4633_s3 + $0x120] ss:$16 sps:$4 sm:$0xff]  }
 0x17e   :  { %v992_v26 = vpop.f32.mrb[80].mxu0  ;;  %v1597_v55 = vpack.c.bf16 %v1445_v20, %v1443_v18  ;;  %v1446_v15 = vsel %vm1190_vm1, %v989_v10, %v1318_v13  ;;  %2237 = vmatprep.mubr.bf16.mxu1 %v3447_v12 }
 0x17f   :  { %v993_v23 = vadd.f32 %v992_v26, %v364_v16  ;;  %v994_v11 = vpop.f32.mrb[81].mxu0  ;;  %v1598_v30 = vpack.c.bf16 %v1446_v15, %v1444_v24 }
 0x180   :  { %v995_v27 = vadd.f32 %v994_v11, %v364_v16  ;;  %v996_v51 = vpop.f32.mrb[82].mxu0  ;;  %v3456_v16 = vld [vmem:[%s4633_s3 + $0x144] ss:$16 sps:$4 sm:$0xff]  }
 0x181   :  { %v1319_v31 = vmul.f32 0.2, %v993_v23  ;;  %v997_v33 = vadd.f32 %v996_v51, %v369_v25  ;;  %v998_v63 = vpop.f32.mrb[83].mxu0  ;;  %vm1191_vm2 = vcmp.gt.f32.partialorder %v993_v23, 0.0  ;;  %2334 = vmatprep.subr.bf16.mxu1 %v1598_v30  ;;  %v399_v30 = vpop.permute.xlu1 %398 }
 0x182   :  { %v1320_v3 = vmul.f32 0.2, %v995_v27  ;;  %v999_v29 = vadd.f32 %v998_v63, %v369_v25  ;;  %vm1192_vm3 = vcmp.gt.f32.partialorder %v995_v27, 0.0  ;;  %2335 = vmatpush1.bf16.msra.mxu1 %v1597_v55  ;;  %v394_v55 = vpop.permute.xlu0 %393 }
 0x183   :  { %vm1193_vm4 = vcmp.gt.f32.partialorder %v997_v33, 0.0  ;;  %v1321_v36 = vmul.f32 0.2, %v997_v33  ;;  %v1447_v57 = vsel %vm1191_vm2, %v993_v23, %v1319_v31 }
 0x184   :  { %vm1194_vm5 = vcmp.gt.f32.partialorder %v999_v29, 0.0  ;;  %v1322_v38 = vmul.f32 0.2, %v999_v29  ;;  %v1448_v32 = vsel %vm1192_vm3, %v995_v27, %v1320_v3 }
 0x185   :  { %v1449_v39 = vsel %vm1193_vm4, %v997_v33, %v1321_v36  ;;  %2238 = vmatmul.mubr.bf16.gmra.mrb[16].mxu1 %v3449_v35 }
 0x186   :  { %v1599_v42 = vpack.c.bf16 %v1449_v39, %v1447_v57  ;;  %v1002_v40 = vpop.f32.mrb[84].mxu0  ;;  %v1450_v44 = vsel %vm1194_vm5, %v999_v29, %v1322_v38  ;;  %2247 = vmatprep.mubr.bf16.mxu1 %v3450_v14  ;;  %v3458_v14 = vld [vmem:[%s4633_s3 + $0x140] ss:$16 sps:$4 sm:$0xff]   ;;  %v3459_v57 = vld [vmem:[%s4633_s3 + $0x164] ss:$16 sps:$4 sm:$0xff]  }
 0x187   :  { %v1003_v45 = vadd.f32 %v1002_v40, %v374_v19  ;;  %v1004_v46 = vpop.f32.mrb[85].mxu0  ;;  %v1600_v47 = vpack.c.bf16 %v1450_v44, %v1448_v32  ;;  %v404_v40 = vpop.permute.xlu0 %403 }
 0x188   :  { %v1005_v17 = vadd.f32 %v1004_v46, %v374_v19  ;;  %v1006_v48 = vpop.f32.mrb[86].mxu0 }
 0x189   :  { %v1323_v28 = vmul.f32 0.2, %v1003_v45  ;;  %v1007_v60 = vadd.f32 %v1006_v48, %v379_v6  ;;  %v1008_v50 = vpop.f32.mrb[87].mxu0  ;;  %2336 = vmatprep.subr.bf16.mxu1 %v1600_v47  ;;  %vm1195_vm0 = vcmp.gt.f32.partialorder %v1003_v45, 0.0  ;;  %v409_v48 = vpop.permute.xlu1 %408 }
 0x18a   :  { %v1324_v52 = vmul.f32 0.2, %v1005_v17  ;;  %v1009_v34 = vadd.f32 %v1008_v50, %v379_v6  ;;  %2337 = vmatpush1.bf16.msra.mxu1 %v1599_v42  ;;  %vm1196_vm6 = vcmp.gt.f32.partialorder %v1005_v17, 0.0 }
 0x18b   :  { %vm1197_vm7 = vcmp.gt.f32.partialorder %v1007_v60, 0.0  ;;  %v1325_v49 = vmul.f32 0.2, %v1007_v60  ;;  %v1451_v43 = vsel %vm1195_vm0, %v1003_v45, %v1323_v28 }
 0x18c   :  { %vm1198_vm8 = vcmp.gt.f32.partialorder %v1009_v34, 0.0  ;;  %v1326_v59 = vmul.f32 0.2, %v1009_v34  ;;  %v1452_v1 = vsel %vm1196_vm6, %v1005_v17, %v1324_v52 }
 0x18d   :  { %v1453_v21 = vsel %vm1197_vm7, %v1007_v60, %v1325_v49  ;;  %2248 = vmatmul.mubr.bf16.gmra.mrb[20].mxu1 %v3452_v56 }
 0x18e   :  { %v1601_v0 = vpack.c.bf16 %v1453_v21, %v1451_v43  ;;  %v1012_v37 = vpop.f32.mrb[88].mxu0  ;;  %v1454_v54 = vsel %vm1198_vm8, %v1009_v34, %v1326_v59  ;;  %2257 = vmatprep.mubr.bf16.mxu1 %v3453_v58  ;;  %v3461_v58 = vld [vmem:[%s4633_s3 + $0x160] ss:$16 sps:$4 sm:$0xff]   ;;  %v3462_v43 = vld [vmem:[%s4633_s3 + $0x184] ss:$16 sps:$4 sm:$0xff]  }
 0x18f   :  { %v1013_v2 = vadd.f32 %v1012_v37, %v384_v61  ;;  %v1014_v9 = vpop.f32.mrb[89].mxu0  ;;  %v1602_v4 = vpack.c.bf16 %v1454_v54, %v1452_v1  ;;  %v414_v37 = vpop.permute.xlu0 %413 }
 0x190   :  { %v1015_v5 = vadd.f32 %v1014_v9, %v384_v61  ;;  %v1016_v8 = vpop.f32.mrb[90].mxu0 }
 0x191   :  { %v1327_v22 = vmul.f32 0.2, %v1013_v2  ;;  %v1017_v62 = vadd.f32 %v1016_v8, %v389_v53  ;;  %v1018_v41 = vpop.f32.mrb[91].mxu0  ;;  %2338 = vmatprep.subr.bf16.mxu1 %v1602_v4  ;;  %vm1199_vm9 = vcmp.gt.f32.partialorder %v1013_v2, 0.0  ;;  %v419_v8 = vpop.permute.xlu1 %418 }
 0x192   :  { %v1328_v10 = vmul.f32 0.2, %v1015_v5  ;;  %v1019_v12 = vadd.f32 %v1018_v41, %v389_v53  ;;  %2339 = vmatpush1.bf16.msra.mxu1 %v1601_v0  ;;  %vm1200_vm10 = vcmp.gt.f32.partialorder %v1015_v5, 0.0 }
 0x193   :  { %vm1201_vm11 = vcmp.gt.f32.partialorder %v1017_v62, 0.0  ;;  %v1329_v13 = vmul.f32 0.2, %v1017_v62  ;;  %v1455_v20 = vsel %vm1199_vm9, %v1013_v2, %v1327_v22 }
 0x194   :  { %vm1202_vm12 = vcmp.gt.f32.partialorder %v1019_v12, 0.0  ;;  %v1330_v18 = vmul.f32 0.2, %v1019_v12  ;;  %v1456_v24 = vsel %vm1200_vm10, %v1015_v5, %v1328_v10 }
 0x195   :  { %v1457_v26 = vsel %vm1201_vm11, %v1017_v62, %v1329_v13  ;;  %2258 = vmatmul.mubr.bf16.gmra.mrb[24].mxu1 %v3455_v7 }
 0x196   :  { %v1603_v23 = vpack.c.bf16 %v1457_v26, %v1455_v20  ;;  %v1022_v11 = vpop.f32.mrb[92].mxu0  ;;  %v1458_v15 = vsel %vm1202_vm12, %v1019_v12, %v1330_v18  ;;  %2267 = vmatprep.mubr.bf16.mxu1 %v3456_v16  ;;  %v3464_v16 = vld [vmem:[%s4633_s3 + $0x180] ss:$16 sps:$4 sm:$0xff]   ;;  %v3465_v20 = vld [vmem:[%s4633_s3 + $0x1a4] ss:$16 sps:$4 sm:$0xff]  }
 0x197   :  { %v1023_v25 = vadd.f32 %v1022_v11, %v394_v55  ;;  %v1024_v27 = vpop.f32.mrb[93].mxu0  ;;  %v1604_v51 = vpack.c.bf16 %v1458_v15, %v1456_v24  ;;  %v424_v11 = vpop.permute.xlu0 %423 }
 0x198   :  { %v1025_v31 = vadd.f32 %v1024_v27, %v394_v55  ;;  %v1026_v33 = vpop.f32.mrb[94].mxu0 }
 0x199   :  { %v1331_v63 = vmul.f32 0.2, %v1023_v25  ;;  %v1027_v3 = vadd.f32 %v1026_v33, %v399_v30  ;;  %v1028_v29 = vpop.f32.mrb[95].mxu0  ;;  %2340 = vmatprep.subr.bf16.mxu1 %v1604_v51  ;;  %vm1203_vm13 = vcmp.gt.f32.partialorder %v1023_v25, 0.0  ;;  %v429_v33 = vpop.permute.xlu1 %428 }
 0x19a   :  { %v1332_v35 = vmul.f32 0.2, %v1025_v31  ;;  %v1029_v36 = vadd.f32 %v1028_v29, %v399_v30  ;;  %2341 = vmatpush1.bf16.msra.mxu1 %v1603_v23  ;;  %vm1204_vm14 = vcmp.gt.f32.partialorder %v1025_v31, 0.0 }
 0x19b   :  { %vm1205_vm15 = vcmp.gt.f32.partialorder %v1027_v3, 0.0  ;;  %v1333_v38 = vmul.f32 0.2, %v1027_v3  ;;  %v1459_v19 = vsel %vm1203_vm13, %v1023_v25, %v1331_v63 }
 0x19c   :  { %vm1206_vm1 = vcmp.gt.f32.partialorder %v1029_v36, 0.0  ;;  %v1334_v39 = vmul.f32 0.2, %v1029_v36  ;;  %v1460_v45 = vsel %vm1204_vm14, %v1025_v31, %v1332_v35 }
 0x19d   :  { %v1461_v42 = vsel %vm1205_vm15, %v1027_v3, %v1333_v38  ;;  %2268 = vmatmul.mubr.bf16.gmra.mrb[28].mxu1 %v3458_v14 }
 0x19e   :  { %v1605_v32 = vpack.c.bf16 %v1461_v42, %v1459_v19  ;;  %v1032_v44 = vpop.f32.mrb[96].mxu0  ;;  %v1462_v46 = vsel %vm1206_vm1, %v1029_v36, %v1334_v39  ;;  %2277 = vmatprep.mubr.bf16.mxu1 %v3459_v57  ;;  %v3467_v57 = vld [vmem:[%s4633_s3 + $0x1a0] ss:$16 sps:$4 sm:$0xff]   ;;  %v3468_v19 = vld [vmem:[%s4633_s3 + $0x1c4] ss:$16 sps:$4 sm:$0xff]  }
 0x19f   :  { %v1033_v47 = vadd.f32 %v1032_v44, %v404_v40  ;;  %v1034_v6 = vpop.f32.mrb[97].mxu0  ;;  %v1606_v17 = vpack.c.bf16 %v1462_v46, %v1460_v45  ;;  %v434_v44 = vpop.permute.xlu0 %433 }
 0x1a0   :  { %v1035_v28 = vadd.f32 %v1034_v6, %v404_v40  ;;  %v1036_v60 = vpop.f32.mrb[98].mxu0 }
 0x1a1   :  { %v1335_v50 = vmul.f32 0.2, %v1033_v47  ;;  %v1037_v52 = vadd.f32 %v1036_v60, %v409_v48  ;;  %v1038_v34 = vpop.f32.mrb[99].mxu0  ;;  %2342 = vmatprep.subr.bf16.mxu1 %v1606_v17  ;;  %vm1207_vm2 = vcmp.gt.f32.partialorder %v1033_v47, 0.0  ;;  %v439_v60 = vpop.permute.xlu1 %438 }
 0x1a2   :  { %v1336_v56 = vmul.f32 0.2, %v1035_v28  ;;  %v1039_v49 = vadd.f32 %v1038_v34, %v409_v48  ;;  %2343 = vmatpush1.bf16.msra.mxu1 %v1605_v32  ;;  %vm1208_vm3 = vcmp.gt.f32.partialorder %v1035_v28, 0.0 }
 0x1a3   :  { %vm1209_vm4 = vcmp.gt.f32.partialorder %v1037_v52, 0.0  ;;  %v1337_v59 = vmul.f32 0.2, %v1037_v52  ;;  %v1463_v61 = vsel %vm1207_vm2, %v1033_v47, %v1335_v50 }
 0x1a4   :  { %vm1210_vm5 = vcmp.gt.f32.partialorder %v1039_v49, 0.0  ;;  %v1338_v21 = vmul.f32 0.2, %v1039_v49  ;;  %v1464_v2 = vsel %vm1208_vm3, %v1035_v28, %v1336_v56 }
 0x1a5   :  { %v1465_v0 = vsel %vm1209_vm4, %v1037_v52, %v1337_v59  ;;  %2278 = vmatmul.mubr.bf16.gmra.mrb[32].mxu1 %v3461_v58 }
 0x1a6   :  { %v1607_v1 = vpack.c.bf16 %v1465_v0, %v1463_v61  ;;  %v1042_v54 = vpop.f32.mrb[100].mxu0  ;;  %v1466_v9 = vsel %vm1210_vm5, %v1039_v49, %v1338_v21  ;;  %2287 = vmatprep.mubr.bf16.mxu1 %v3462_v43  ;;  %v3470_v43 = vld [vmem:[%s4633_s3 + $0x1c0] ss:$16 sps:$4 sm:$0xff]   ;;  %v3471_v61 = vld [vmem:[%s4633_s3 + $0x1e4] ss:$16 sps:$4 sm:$0xff]  }
 0x1a7   :  { %v1043_v4 = vadd.f32 %v1042_v54, %v414_v37  ;;  %v1044_v53 = vpop.f32.mrb[101].mxu0  ;;  %v1608_v5 = vpack.c.bf16 %v1466_v9, %v1464_v2 }
 0x1a8   :  { %v1045_v22 = vadd.f32 %v1044_v53, %v414_v37  ;;  %v1046_v62 = vpop.f32.mrb[102].mxu0 }
 0x1a9   :  { %v1339_v41 = vmul.f32 0.2, %v1043_v4  ;;  %v1047_v10 = vadd.f32 %v1046_v62, %v419_v8  ;;  %v1048_v12 = vpop.f32.mrb[103].mxu0  ;;  %2344 = vmatprep.subr.bf16.mxu1 %v1608_v5  ;;  %vm1211_vm0 = vcmp.gt.f32.partialorder %v1043_v4, 0.0  ;;  %v449_v62 = vpop.permute.xlu1 %448 }
 0x1aa   :  { %v1340_v7 = vmul.f32 0.2, %v1045_v22  ;;  %v1049_v13 = vadd.f32 %v1048_v12, %v419_v8  ;;  %2345 = vmatpush1.bf16.msra.mxu1 %v1607_v1  ;;  %vm1212_vm6 = vcmp.gt.f32.partialorder %v1045_v22, 0.0 }
 0x1ab   :  { %vm1213_vm7 = vcmp.gt.f32.partialorder %v1047_v10, 0.0  ;;  %v1341_v18 = vmul.f32 0.2, %v1047_v10  ;;  %v1467_v55 = vsel %vm1211_vm0, %v1043_v4, %v1339_v41  ;;  %v444_v4 = vpop.permute.xlu0 %443 }
 0x1ac   :  { %vm1214_vm8 = vcmp.gt.f32.partialorder %v1049_v13, 0.0  ;;  %v1342_v26 = vmul.f32 0.2, %v1049_v13  ;;  %v1468_v25 = vsel %vm1212_vm6, %v1045_v22, %v1340_v7 }
 0x1ad   :  { %v1469_v23 = vsel %vm1213_vm7, %v1047_v10, %v1341_v18  ;;  %2288 = vmatmul.mubr.bf16.gmra.mrb[36].mxu1 %v3464_v16  ;;  %v3473_v16 = vld [vmem:[%s4633_s3 + $0x1e0] ss:$16 sps:$4 sm:$0xff]  }
 0x1ae   :  { %v1609_v24 = vpack.c.bf16 %v1469_v23, %v1467_v55  ;;  %v1052_v15 = vpop.f32.mrb[104].mxu0  ;;  %v1470_v27 = vsel %vm1214_vm8, %v1049_v13, %v1342_v26  ;;  %2297 = vmatprep.mubr.bf16.mxu1 %v3465_v20  ;;  %v3476_v26 = vld [vmem:[%s4633_s3 + $0xc] ss:$16 sps:$4 sm:$0xff]  }
 0x1af   :  { %v1053_v51 = vadd.f32 %v1052_v15, %v424_v11  ;;  %v1054_v30 = vpop.f32.mrb[105].mxu0  ;;  %v1610_v31 = vpack.c.bf16 %v1470_v27, %v1468_v25  ;;  %v454_v15 = vpop.permute.xlu0 %453 }
 0x1b0   :  { %v1055_v63 = vadd.f32 %v1054_v30, %v424_v11  ;;  %v1056_v3 = vpop.f32.mrb[106].mxu0 }
 0x1b1   :  { %v1343_v29 = vmul.f32 0.2, %v1053_v51  ;;  %v1057_v35 = vadd.f32 %v1056_v3, %v429_v33  ;;  %v1058_v36 = vpop.f32.mrb[107].mxu0  ;;  %2346 = vmatprep.subr.bf16.mxu1 %v1610_v31  ;;  %vm1215_vm9 = vcmp.gt.f32.partialorder %v1053_v51, 0.0  ;;  %v459_v3 = vpop.permute.xlu1 %458 }
 0x1b2   :  { %v1344_v14 = vmul.f32 0.2, %v1055_v63  ;;  %v1059_v38 = vadd.f32 %v1058_v36, %v429_v33  ;;  %2347 = vmatpush1.bf16.msra.mxu1 %v1609_v24  ;;  %vm1216_vm10 = vcmp.gt.f32.partialorder %v1055_v63, 0.0 }
 0x1b3   :  { %vm1217_vm11 = vcmp.gt.f32.partialorder %v1057_v35, 0.0  ;;  %v1345_v39 = vmul.f32 0.2, %v1057_v35  ;;  %v1471_v40 = vsel %vm1215_vm9, %v1053_v51, %v1343_v29 }
 0x1b4   :  { %vm1218_vm12 = vcmp.gt.f32.partialorder %v1059_v38, 0.0  ;;  %v1346_v42 = vmul.f32 0.2, %v1059_v38  ;;  %v1472_v47 = vsel %vm1216_vm10, %v1055_v63, %v1344_v14 }
 0x1b5   :  { %v1473_v32 = vsel %vm1217_vm11, %v1057_v35, %v1345_v39  ;;  %2298 = vmatmul.mubr.bf16.gmra.mrb[40].mxu1 %v3467_v57 }
 0x1b6   :  { %v1611_v45 = vpack.c.bf16 %v1473_v32, %v1471_v40  ;;  %v1062_v46 = vpop.f32.mrb[108].mxu0  ;;  %v1474_v6 = vsel %vm1218_vm12, %v1059_v38, %v1346_v42  ;;  %2307 = vmatprep.mubr.bf16.mxu1 %v3468_v19 }
 0x1b7   :  { %v1063_v17 = vadd.f32 %v1062_v46, %v434_v44  ;;  %v1064_v48 = vpop.f32.mrb[109].mxu0  ;;  %v1612_v28 = vpack.c.bf16 %v1474_v6, %v1472_v47 }
 0x1b8   :  { %v1065_v50 = vadd.f32 %v1064_v48, %v434_v44  ;;  %v1066_v52 = vpop.f32.mrb[110].mxu0  ;;  %v464_v44 = vpop.permute.xlu0 %463 }
 0x1b9   :  { %v1347_v34 = vmul.f32 0.2, %v1063_v17  ;;  %v1067_v56 = vadd.f32 %v1066_v52, %v439_v60  ;;  %v1068_v49 = vpop.f32.mrb[111].mxu0  ;;  %2348 = vmatprep.subr.bf16.mxu1 %v1612_v28  ;;  %vm1219_vm13 = vcmp.gt.f32.partialorder %v1063_v17, 0.0 }
 0x1ba   :  { %v1348_v58 = vmul.f32 0.2, %v1065_v50  ;;  %v1069_v59 = vadd.f32 %v1068_v49, %v439_v60  ;;  %2349 = vmatpush1.bf16.msra.mxu1 %v1611_v45  ;;  %vm1220_vm14 = vcmp.gt.f32.partialorder %v1065_v50, 0.0  ;;  %v469_v60 = vpop.permute.xlu1 %468 }
 0x1bb   :  { %vm1221_vm15 = vcmp.gt.f32.partialorder %v1067_v56, 0.0  ;;  %v1349_v21 = vmul.f32 0.2, %v1067_v56  ;;  %v1475_v37 = vsel %vm1219_vm13, %v1063_v17, %v1347_v34 }
 0x1bc   :  { %vm1222_vm1 = vcmp.gt.f32.partialorder %v1069_v59, 0.0  ;;  %v1350_v0 = vmul.f32 0.2, %v1069_v59  ;;  %v1476_v2 = vsel %vm1220_vm14, %v1065_v50, %v1348_v58 }
 0x1bd   :  { %v1477_v1 = vsel %vm1221_vm15, %v1067_v56, %v1349_v21  ;;  %2308 = vmatmul.mubr.bf16.gmra.mrb[44].mxu1 %v3470_v43 }
 0x1be   :  { %v1613_v54 = vpack.c.bf16 %v1477_v1, %v1475_v37  ;;  %v1478_v9 = vsel %vm1222_vm1, %v1069_v59, %v1350_v0  ;;  %2317 = vmatprep.mubr.bf16.mxu1 %v3471_v61  ;;  %v474_v37 = vpop.permute.xlu0 %473 }
 0x1bf   :  { %v1072_v53 = vpop.f32.mrb[112].mxu0  ;;  %v1614_v5 = vpack.c.bf16 %v1478_v9, %v1476_v2 }
 0x1c0   :  { %v1073_v8 = vadd.f32 %v1072_v53, %v444_v4  ;;  %v1074_v22 = vpop.f32.mrb[113].mxu0 }
 0x1c1   :  { %v1075_v41 = vadd.f32 %v1074_v22, %v444_v4  ;;  %v1076_v10 = vpop.f32.mrb[114].mxu0  ;;  %2350 = vmatprep.subr.bf16.mxu1 %v1614_v5 }
 0x1c2   :  { %v1351_v12 = vmul.f32 0.2, %v1073_v8  ;;  %v1077_v7 = vadd.f32 %v1076_v10, %v449_v62  ;;  %v1078_v13 = vpop.f32.mrb[115].mxu0  ;;  %2351 = vmatpush1.bf16.msra.mxu1 %v1613_v54  ;;  %vm1223_vm2 = vcmp.gt.f32.partialorder %v1073_v8, 0.0 }
 0x1c3   :  { %v1352_v18 = vmul.f32 0.2, %v1075_v41  ;;  %v1079_v20 = vadd.f32 %v1078_v13, %v449_v62  ;;  %vm1224_vm3 = vcmp.gt.f32.partialorder %v1075_v41, 0.0 }
 0x1c4   :  { %vm1225_vm4 = vcmp.gt.f32.partialorder %v1077_v7, 0.0  ;;  %v1353_v55 = vmul.f32 0.2, %v1077_v7  ;;  %v1479_v11 = vsel %vm1223_vm2, %v1073_v8, %v1351_v12  ;;  %v479_v8 = vpop.permute.xlu1 %478 }
 0x1c5   :  { %vm1226_vm5 = vcmp.gt.f32.partialorder %v1079_v20, 0.0  ;;  %v1354_v23 = vmul.f32 0.2, %v1079_v20  ;;  %2318 = vmatmul.mubr.bf16.gmra.mrb[48].mxu1 %v3473_v16  ;;  %v1480_v51 = vsel %vm1224_vm3, %v1075_v41, %v1352_v18 }
 0x1c6   :  { %v1481_v24 = vsel %vm1225_vm4, %v1077_v7, %v1353_v55  ;;  %2360 = vmatprep.mubr.bf16.mxu1 %v3476_v26 }
 0x1c7   :  { %v1615_v25 = vpack.c.bf16 %v1481_v24, %v1479_v11  ;;  %v1082_v27 = vpop.f32.mrb[116].mxu0  ;;  %v1482_v30 = vsel %vm1226_vm5, %v1079_v20, %v1354_v23 }
 0x1c8   :  { %v1083_v31 = vadd.f32 %v1082_v27, %v454_v15  ;;  %v1084_v33 = vpop.f32.mrb[117].mxu0  ;;  %v1616_v63 = vpack.c.bf16 %v1482_v30, %v1480_v51  ;;  %v3479_v27 = vld [vmem:[%s4633_s3 + $0x28] ss:$16 sps:$4 sm:$0xff]   ;;  %v3480_v51 = vld [vmem:[%s4633_s3 + $0x4c] ss:$16 sps:$4 sm:$0xff]  }
 0x1c9   :  { %v1085_v29 = vadd.f32 %v1084_v33, %v454_v15  ;;  %v1086_v35 = vpop.f32.mrb[118].mxu0  ;;  %v3474_v15 = vld [vmem:[%s4633_s3 + $0x8] ss:$16 sps:$4 sm:$0xff]  }
 0x1ca   :  { %v1355_v36 = vmul.f32 0.2, %v1083_v31  ;;  %v1087_v14 = vadd.f32 %v1086_v35, %v459_v3  ;;  %v1088_v38 = vpop.f32.mrb[119].mxu0  ;;  %2352 = vmatprep.subr.bf16.mxu1 %v1616_v63  ;;  %vm1227_vm0 = vcmp.gt.f32.partialorder %v1083_v31, 0.0  ;;  %v3482_v30 = vld [vmem:[%s4633_s3 + $0x48] ss:$16 sps:$4 sm:$0xff]  }
 0x1cb   :  { %v1356_v57 = vmul.f32 0.2, %v1085_v29  ;;  %v1089_v39 = vadd.f32 %v1088_v38, %v459_v3  ;;  %2353 = vmatpush1.bf16.msra.mxu1 %v1615_v25  ;;  %vm1228_vm6 = vcmp.gt.f32.partialorder %v1085_v29, 0.0  ;;  %v3477_v25 = vld [vmem:[%s4633_s3 + $0x2c] ss:$16 sps:$4 sm:$0xff]  }
 0x1cc   :  { %vm1229_vm7 = vcmp.gt.f32.partialorder %v1087_v14, 0.0  ;;  %v1357_v19 = vmul.f32 0.2, %v1087_v14  ;;  %v1483_v40 = vsel %vm1227_vm0, %v1083_v31, %v1355_v36  ;;  %v3483_v31 = vld [vmem:[%s4633_s3 + $0x6c] ss:$16 sps:$4 sm:$0xff]  }
 0x1cd   :  { %vm1230_vm8 = vcmp.gt.f32.partialorder %v1089_v39, 0.0  ;;  %v1358_v42 = vmul.f32 0.2, %v1089_v39  ;;  %v1484_v47 = vsel %vm1228_vm6, %v1085_v29, %v1356_v57  ;;  %v3485_v33 = vld [vmem:[%s4633_s3 + $0x68] ss:$16 sps:$4 sm:$0xff]  }
 0x1ce   :  { %v1485_v32 = vsel %vm1229_vm7, %v1087_v14, %v1357_v19  ;;  %v3486_v63 = vld [vmem:[%s4633_s3 + $0x8c] ss:$16 sps:$4 sm:$0xff]   ;;  %v3488_v3 = vld [vmem:[%s4633_s3 + $0x88] ss:$16 sps:$4 sm:$0xff]  }
 0x1cf   :  { %v1617_v45 = vpack.c.bf16 %v1485_v32, %v1483_v40  ;;  %v1092_v46 = vpop.f32.mrb[120].mxu0  ;;  %v1486_v6 = vsel %vm1230_vm8, %v1089_v39, %v1358_v42  ;;  %v3489_v29 = vld [vmem:[%s4633_s3 + $0xac] ss:$16 sps:$4 sm:$0xff]   ;;  %v3491_v35 = vld [vmem:[%s4633_s3 + $0xa8] ss:$16 sps:$4 sm:$0xff]  }
 0x1d0   :  { %v1093_v17 = vadd.f32 %v1092_v46, %v464_v44  ;;  %v1094_v48 = vpop.f32.mrb[121].mxu0  ;;  %v1618_v28 = vpack.c.bf16 %v1486_v6, %v1484_v47  ;;  %v3492_v36 = vld [vmem:[%s4633_s3 + $0xcc] ss:$16 sps:$4 sm:$0xff]   ;;  %v3494_v14 = vld [vmem:[%s4633_s3 + $0xc8] ss:$16 sps:$4 sm:$0xff]  }
 0x1d1   :  { %v1095_v50 = vadd.f32 %v1094_v48, %v464_v44  ;;  %v1096_v52 = vpop.f32.mrb[122].mxu0  ;;  %v3495_v38 = vld [vmem:[%s4633_s3 + $0xec] ss:$16 sps:$4 sm:$0xff]   ;;  %v3497_v57 = vld [vmem:[%s4633_s3 + $0xe8] ss:$16 sps:$4 sm:$0xff]  }
 0x1d2   :  { %v1359_v34 = vmul.f32 0.2, %v1093_v17  ;;  %v1097_v56 = vadd.f32 %v1096_v52, %v469_v60  ;;  %v1098_v49 = vpop.f32.mrb[123].mxu0  ;;  %2354 = vmatprep.subr.bf16.mxu1 %v1618_v28  ;;  %vm1231_vm9 = vcmp.gt.f32.partialorder %v1093_v17, 0.0  ;;  %v3498_v39 = vld [vmem:[%s4633_s3 + $0x10c] ss:$16 sps:$4 sm:$0xff]  }
 0x1d3   :  { %v1360_v58 = vmul.f32 0.2, %v1095_v50  ;;  %v1099_v59 = vadd.f32 %v1098_v49, %v469_v60  ;;  %2355 = vmatpush1.bf16.msra.mxu1 %v1617_v45  ;;  %vm1232_vm10 = vcmp.gt.f32.partialorder %v1095_v50, 0.0  ;;  %v3500_v19 = vld [vmem:[%s4633_s3 + $0x108] ss:$16 sps:$4 sm:$0xff]  }
 0x1d4   :  { %vm1233_vm11 = vcmp.gt.f32.partialorder %v1097_v56, 0.0  ;;  %v1361_v43 = vmul.f32 0.2, %v1097_v56  ;;  %v1487_v61 = vsel %vm1231_vm9, %v1093_v17, %v1359_v34  ;;  %v3501_v42 = vld [vmem:[%s4633_s3 + $0x12c] ss:$16 sps:$4 sm:$0xff]  }
 0x1d5   :  { %vm1234_vm12 = vcmp.gt.f32.partialorder %v1099_v59, 0.0  ;;  %v1362_v21 = vmul.f32 0.2, %v1099_v59  ;;  %v1488_v2 = vsel %vm1232_vm10, %v1095_v50, %v1360_v58  ;;  %v3503_v40 = vld [vmem:[%s4633_s3 + $0x128] ss:$16 sps:$4 sm:$0xff]  }
 0x1d6   :  { %v1489_v0 = vsel %vm1233_vm11, %v1097_v56, %v1361_v43  ;;  %v3504_v32 = vld [vmem:[%s4633_s3 + $0x14c] ss:$16 sps:$4 sm:$0xff]   ;;  %v3506_v44 = vld [vmem:[%s4633_s3 + $0x148] ss:$16 sps:$4 sm:$0xff]  }
 0x1d7   :  { %v1619_v1 = vpack.c.bf16 %v1489_v0, %v1487_v61  ;;  %v1102_v54 = vpop.f32.mrb[124].mxu0  ;;  %v1490_v9 = vsel %vm1234_vm12, %v1099_v59, %v1362_v21  ;;  %v3507_v45 = vld [vmem:[%s4633_s3 + $0x16c] ss:$16 sps:$4 sm:$0xff]   ;;  %v3509_v6 = vld [vmem:[%s4633_s3 + $0x168] ss:$16 sps:$4 sm:$0xff]  }
 0x1d8   :  { %v1103_v4 = vadd.f32 %v1102_v54, %v474_v37  ;;  %v1104_v53 = vpop.f32.mrb[125].mxu0  ;;  %v1620_v5 = vpack.c.bf16 %v1490_v9, %v1488_v2  ;;  %v3510_v48 = vld [vmem:[%s4633_s3 + $0x18c] ss:$16 sps:$4 sm:$0xff]   ;;  %v3512_v52 = vld [vmem:[%s4633_s3 + $0x188] ss:$16 sps:$4 sm:$0xff]   ;;  %v1663_v2 = vpop.permute.xlu1 %1662 }
 0x1d9   :  { %v1105_v22 = vadd.f32 %v1104_v53, %v474_v37  ;;  %v1106_v62 = vpop.f32.mrb[126].mxu0  ;;  %v3513_v56 = vld [vmem:[%s4633_s3 + $0x1ac] ss:$16 sps:$4 sm:$0xff]   ;;  %v3515_v43 = vld [vmem:[%s4633_s3 + $0x1a8] ss:$16 sps:$4 sm:$0xff]   ;;  %v1658_v9 = vpop.permute.xlu0 %1657 }
 0x1da   :  { %v1363_v41 = vmul.f32 0.2, %v1103_v4  ;;  %v1107_v10 = vadd.f32 %v1106_v62, %v479_v8  ;;  %v1108_v12 = vpop.f32.mrb[127].mxu0  ;;  %2356 = vmatprep.subr.bf16.mxu1 %v1620_v5  ;;  %vm1235_vm13 = vcmp.gt.f32.partialorder %v1103_v4, 0.0  ;;  %v3516_v61 = vld [vmem:[%s4633_s3 + $0x1cc] ss:$16 sps:$4 sm:$0xff]  }
 0x1db   :  { %v1364_v7 = vmul.f32 0.2, %v1105_v22  ;;  %v1109_v13 = vadd.f32 %v1108_v12, %v479_v8  ;;  %2357 = vmatpush1.bf16.msra.mxu1 %v1619_v1  ;;  %vm1236_vm14 = vcmp.gt.f32.partialorder %v1105_v22, 0.0  ;;  %v3518_v37 = vld [vmem:[%s4633_s3 + $0x1c8] ss:$16 sps:$4 sm:$0xff]  }
 0x1dc   :  { %vm1237_vm15 = vcmp.gt.f32.partialorder %v1107_v10, 0.0  ;;  %v1365_v16 = vmul.f32 0.2, %v1107_v10  ;;  %v1491_v20 = vsel %vm1235_vm13, %v1103_v4, %v1363_v41  ;;  %v3519_v1 = vld [vmem:[%s4633_s3 + $0x1ec] ss:$16 sps:$4 sm:$0xff]   ;;  %v1673_v4 = vpop.permute.xlu1 %1672 }
 0x1dd   :  { %vm1238_vm1 = vcmp.gt.f32.partialorder %v1109_v13, 0.0  ;;  %v1366_v18 = vmul.f32 0.2, %v1109_v13  ;;  %v1492_v23 = vsel %vm1236_vm14, %v1105_v22, %v1364_v7  ;;  %v3521_v54 = vld [vmem:[%s4633_s3 + $0x1e8] ss:$16 sps:$4 sm:$0xff]   ;;  %v1668_v53 = vpop.permute.xlu0 %1667 }
 0x1de   :  { %v1493_v26 = vsel %vm1237_vm15, %v1107_v10, %v1365_v16 }
 0x1df   :  { %v1621_v55 = vpack.c.bf16 %v1493_v26, %v1491_v20  ;;  %v1494_v11 = vsel %vm1238_vm1, %v1109_v13, %v1366_v18 }
 0x1e0   :  { %v1622_v24 = vpack.c.bf16 %v1494_v11, %v1492_v23  ;;  %v4472_v5 = vpop.permute.xlu1 %1682 }
 0x1e1   :  { %v4474_v8 = vpop.permute.xlu0 %1677 }
 0x1e2   :  { %2358 = vmatprep.subr.bf16.mxu1 %v1622_v24 }
 0x1e3   :  { %2359 = vmatpush1.bf16.msra.mxu1 %v1621_v55 }
 0x1e4   :  { %v4476_v22 = vpop.permute.xlu1 %1692 }
 0x1e5   :  { %v4478_v62 = vpop.permute.xlu0 %1687 }
 0x1e6   :  { %2361 = vmatmul.mubr.bf16.vlgmr.msra.gmra.mrb[52].mxu1 %v3474_v15 }
 0x1e7   :  { %2370 = vmatprep.mubr.bf16.mxu1 %v3477_v25 }
 0x1e8   :  { %v4480_v41 = vpop.permute.xlu1 %1702 }
 0x1e9   :  { %v4482_v10 = vpop.permute.xlu0 %1697 }
 0x1ec   :  { %v4484_v12 = vpop.permute.xlu1 %1712 }
 0x1ed   :  { %v4486_v7 = vpop.permute.xlu0 %1707 }
 0x1ee   :  { %2371 = vmatmul.mubr.bf16.gmra.mrb[56].mxu1 %v3479_v27 }
 0x1ef   :  { %2380 = vmatprep.mubr.bf16.mxu1 %v3480_v51 }
 0x1f0   :  { %v4488_v13 = vpop.permute.xlu1 %1722 }
 0x1f1   :  { %v4490_v16 = vpop.permute.xlu0 %1717 }
 0x1f4   :  { %v4492_v18 = vpop.permute.xlu1 %1732 }
 0x1f5   :  { %v4494_v20 = vpop.permute.xlu0 %1727 }
 0x1f6   :  { %2381 = vmatmul.mubr.bf16.gmra.mrb[60].mxu1 %v3482_v30 }
 0x1f7   :  { %2390 = vmatprep.mubr.bf16.mxu1 %v3483_v31 }
 0x1f8   :  { %v4496_v26 = vpop.permute.xlu1 %1742 }
 0x1f9   :  { %v4498_v55 = vpop.permute.xlu0 %1737 }
 0x1fc   :  { %v4500_v23 = vpop.permute.xlu1 %1752 }
 0x1fd   :  { %v4502_v11 = vpop.permute.xlu0 %1747 }
 0x1fe   :  { %2391 = vmatmul.mubr.bf16.gmra.mrb[0].mxu1 %v3485_v33 }
 0x1ff   :  { %2400 = vmatprep.mubr.bf16.mxu1 %v3486_v63 }
 0x200   :  { %v2748_v24 = vpop.permute.xlu1 %2747 }
 0x201   :  { %v4504_v15 = vpop.permute.xlu0 %1757 }
 0x206   :  { %2401 = vmatmul.mubr.bf16.gmra.mrb[4].mxu1 %v3488_v3 }
 0x207   :  { %2410 = vmatprep.mubr.bf16.mxu1 %v3489_v29 }
 0x20e   :  { %2411 = vmatmul.mubr.bf16.gmra.mrb[8].mxu1 %v3491_v35 }
 0x20f   :  { %2420 = vmatprep.mubr.bf16.mxu1 %v3492_v36 }
 0x216   :  { %2421 = vmatmul.mubr.bf16.gmra.mrb[12].mxu1 %v3494_v14 }
 0x217   :  { %2430 = vmatprep.mubr.bf16.mxu1 %v3495_v38  ;;  %v2758_v38 = vpop.permute.xlu1 %2757 }
 0x21e   :  { %2431 = vmatmul.mubr.bf16.gmra.mrb[16].mxu1 %v3497_v57 }
 0x21f   :  { %2440 = vmatprep.mubr.bf16.mxu1 %v3498_v39 }
 0x226   :  { %2441 = vmatmul.mubr.bf16.gmra.mrb[20].mxu1 %v3500_v19  ;;  %v2753_v19 = vpop.permute.xlu0 %2752 }
 0x227   :  { %2450 = vmatprep.mubr.bf16.mxu1 %v3501_v42 }
 0x22e   :  { %2451 = vmatmul.mubr.bf16.gmra.mrb[24].mxu1 %v3503_v40 }
 0x22f   :  { %2460 = vmatprep.mubr.bf16.mxu1 %v3504_v32 }
 0x236   :  { %2461 = vmatmul.mubr.bf16.gmra.mrb[28].mxu1 %v3506_v44 }
 0x237   :  { %2470 = vmatprep.mubr.bf16.mxu1 %v3507_v45 }
 0x238   :  { %v2169_v46 = vpop.f32.mrb[128].mxu0 }
 0x239   :  { %v2171_v47 = vpop.f32.mrb[129].mxu0  ;;  %v2170_v25 = vadd.f32 %v2169_v46, %v1658_v9 }
 0x23a   :  { %v2173_v17 = vpop.f32.mrb[130].mxu0  ;;  %v2172_v27 = vadd.f32 %v2171_v47, %v1658_v9 }
 0x23b   :  { %v2175_v28 = vpop.f32.mrb[131].mxu0  ;;  %v2174_v30 = vadd.f32 %v2173_v17, %v1663_v2 }
 0x23c   :  { %v2176_v63 = vadd.f32 %v2175_v28, %v1663_v2 }
 0x23e   :  { %2471 = vmatmul.mubr.bf16.gmra.mrb[32].mxu1 %v3509_v6 }
 0x23f   :  { %2480 = vmatprep.mubr.bf16.mxu1 %v3510_v48 }
 0x240   :  { %v4435_v60 = vpop.f32.mrb[132].mxu0 }
 0x241   :  { %v4437_v50 = vpop.f32.mrb[133].mxu0  ;;  %v2180_v45 = vadd.f32 %v4435_v60, %v1668_v53  ;;  %v2763_v60 = vpop.permute.xlu0 %2762 }
 0x242   :  { %v4442_v34 = vpop.f32.mrb[134].mxu0  ;;  %v2182_v47 = vadd.f32 %v4437_v50, %v1668_v53 }
 0x243   :  { %v4447_v49 = vpop.f32.mrb[135].mxu0 }
 0x246   :  { %2481 = vmatmul.mubr.bf16.gmra.mrb[36].mxu1 %v3512_v52  ;;  %v2184_v52 = vadd.f32 %v4442_v34, %v1673_v4 }
 0x247   :  { %2490 = vmatprep.mubr.bf16.mxu1 %v3513_v56 }
 0x248   :  { %v4449_v58 = vpop.f32.mrb[136].mxu0 }
 0x249   :  { %v4451_v59 = vpop.f32.mrb[137].mxu0 }
 0x24a   :  { %v4456_v21 = vpop.f32.mrb[138].mxu0 }
 0x24b   :  { %v4461_v0 = vpop.f32.mrb[139].mxu0 }
 0x24e   :  { %2491 = vmatmul.mubr.bf16.gmra.mrb[40].mxu1 %v3515_v43 }
 0x24f   :  { %2500 = vmatprep.mubr.bf16.mxu1 %v3516_v61 }
 0x256   :  { %2501 = vmatmul.mubr.bf16.gmra.mrb[44].mxu1 %v3518_v37 }
 0x257   :  { %2510 = vmatprep.mubr.bf16.mxu1 %v3519_v1  ;;  %v2768_v1 = vpop.permute.xlu1 %2767 }
 0x25e   :  { %2511 = vmatmul.mubr.bf16.gmra.mrb[48].mxu1 %v3521_v54  ;;  %v2186_v54 = vadd.f32 %v4447_v49, %v1673_v4  ;;  %v2190_v49 = vadd.f32 %v4449_v58, %v4474_v8  ;;  %v2196_v58 = vadd.f32 %v4461_v0, %v4472_v5 }
 0x2b9   :  { %v2362_v51 = vpop.f32.mrb[52].mxu1 }
 0x2ba   :  { %v2363_v31 = vadd.f32 %v2362_v51, %v2170_v25  ;;  %v2364_v33 = vpop.f32.mrb[53].mxu1 }
 0x2bb   :  { %v2365_v3 = vadd.f32 %v2364_v33, %v2172_v27  ;;  %v2366_v29 = vpop.f32.mrb[54].mxu1 }
 0x2bc   :  { %vm2521_vm2 = vcmp.gt.f32.partialorder %v2363_v31, 0.0  ;;  %v2585_v35 = vmul.f32 0.2, %v2363_v31  ;;  %v2367_v36 = vadd.f32 %v2366_v29, %v2174_v30  ;;  %v2368_v14 = vpop.f32.mrb[55].mxu1 }
 0x2bd   :  { %vm2522_vm3 = vcmp.gt.f32.partialorder %v2365_v3, 0.0  ;;  %v2586_v57 = vmul.f32 0.2, %v2365_v3  ;;  %v2369_v39 = vadd.f32 %v2368_v14, %v2176_v63 }
 0x2be   :  { %v2649_v42 = vsel %vm2521_vm2, %v2363_v31, %v2585_v35  ;;  %vm2523_vm4 = vcmp.gt.f32.partialorder %v2367_v36, 0.0  ;;  %v2587_v40 = vmul.f32 0.2, %v2367_v36  ;;  %v4512_v35 = vpop.permute.xlu1 %2777 }
 0x2bf   :  { %v2650_v32 = vsel %vm2522_vm3, %v2365_v3, %v2586_v57  ;;  %vm2524_vm5 = vcmp.gt.f32.partialorder %v2369_v39, 0.0  ;;  %v2588_v44 = vmul.f32 0.2, %v2369_v39  ;;  %v2905_v6 = vmul.f32 %v2748_v24, %v2649_v42  ;;  %v2773_v42 = vpop.permute.xlu0 %2772 }
 0x2c0   :  { %v2651_v46 = vsel %vm2523_vm4, %v2367_v36, %v2587_v40  ;;  %v2906_v56 = vmul.f32 %v2748_v24, %v2650_v32  ;;  %v2192_v36 = vadd.f32 %v4451_v59, %v4474_v8  ;;  %v2194_v40 = vadd.f32 %v4456_v21, %v4472_v5 }
 0x2c1   :  { %v2907_v17 = vmul.f32 %v2753_v19, %v2651_v46  ;;  %v2652_v48 = vsel %vm2524_vm5, %v2369_v39, %v2588_v44  ;;  %v2372_v28 = vpop.f32.mrb[56].mxu1 }
 0x2c2   :  { %v2908_v43 = vmul.f32 %v2753_v19, %v2652_v48  ;;  %v2373_v61 = vadd.f32 %v2372_v28, %v2180_v45  ;;  %v2374_v37 = vpop.f32.mrb[57].mxu1 }
 0x2c3   :  { %v2969_v2 = vadd.f32 %v2907_v17, %v2905_v6  ;;  %v2375_v9 = vadd.f32 %v2374_v37, %v2182_v47  ;;  %v2376_v25 = vpop.f32.mrb[58].mxu1  ;;  %v2783_v5 = vpop.permute.xlu0 %2782 }
 0x2c4   :  { %v3006_v27 = vadd.f32 %v2908_v43, %v2906_v56  ;;  %vm2525_vm0 = vcmp.gt.f32.partialorder %v2373_v61, 0.0  ;;  %v2589_v50 = vmul.f32 0.2, %v2373_v61  ;;  %v2377_v53 = vadd.f32 %v2376_v25, %v2184_v52  ;;  %v2378_v51 = vpop.f32.mrb[59].mxu1  ;;  %v4520_v43 = vpop.permute.xlu1 %2787 }
 0x2c5   :  { %vm2526_vm6 = vcmp.gt.f32.partialorder %v2375_v9, 0.0  ;;  %v2590_v30 = vmul.f32 0.2, %v2375_v9  ;;  %v2379_v31 = vadd.f32 %v2378_v51, %v2186_v54 }
 0x2c6   :  { %v2653_v34 = vsel %vm2525_vm0, %v2373_v61, %v2589_v50  ;;  %vm2527_vm7 = vcmp.gt.f32.partialorder %v2377_v53, 0.0  ;;  %v2591_v24 = vmul.f32 0.2, %v2377_v53 }
 0x2c7   :  { %v2909_v33 = vmul.f32 %v2758_v38, %v2653_v34  ;;  %v2654_v63 = vsel %vm2526_vm6, %v2375_v9, %v2590_v30  ;;  %vm2528_vm8 = vcmp.gt.f32.partialorder %v2379_v31, 0.0  ;;  %v2592_v3 = vmul.f32 0.2, %v2379_v31 }
 0x2c8   :  { %v2910_v4 = vmul.f32 %v2758_v38, %v2654_v63  ;;  %v2655_v29 = vsel %vm2527_vm7, %v2377_v53, %v2591_v24 }
 0x2c9   :  { %v2970_v14 = vadd.f32 %v2969_v2, %v2909_v33  ;;  %v2911_v57 = vmul.f32 %v2763_v60, %v2655_v29  ;;  %v2656_v39 = vsel %vm2528_vm8, %v2379_v31, %v2592_v3  ;;  %v2382_v19 = vpop.f32.mrb[60].mxu1 }
 0x2ca   :  { %v3007_v32 = vadd.f32 %v3006_v27, %v2910_v4  ;;  %v2912_v44 = vmul.f32 %v2763_v60, %v2656_v39  ;;  %v2383_v45 = vadd.f32 %v2382_v19, %v2190_v49  ;;  %v2384_v46 = vpop.f32.mrb[61].mxu1  ;;  %v4525_v49 = vpop.permute.xlu1 %2797 }
 0x2cb   :  { %v2971_v38 = vadd.f32 %v2970_v14, %v2911_v57  ;;  %v2385_v47 = vadd.f32 %v2384_v46, %v2192_v36  ;;  %v2386_v6 = vpop.f32.mrb[62].mxu1  ;;  %v2793_v36 = vpop.permute.xlu0 %2792 }
 0x2cc   :  { %v3008_v17 = vadd.f32 %v3007_v32, %v2912_v44  ;;  %vm2529_vm9 = vcmp.gt.f32.partialorder %v2383_v45, 0.0  ;;  %v2593_v59 = vmul.f32 0.2, %v2383_v45  ;;  %v2387_v8 = vadd.f32 %v2386_v6, %v2194_v40  ;;  %v2388_v48 = vpop.f32.mrb[63].mxu1 }
 0x2cd   :  { %vm2530_vm10 = vcmp.gt.f32.partialorder %v2385_v47, 0.0  ;;  %v2594_v28 = vmul.f32 0.2, %v2385_v47  ;;  %v2389_v52 = vadd.f32 %v2388_v48, %v2196_v58 }
 0x2ce   :  { %v2657_v56 = vsel %vm2529_vm9, %v2383_v45, %v2593_v59  ;;  %vm2531_vm11 = vcmp.gt.f32.partialorder %v2387_v8, 0.0  ;;  %v2595_v21 = vmul.f32 0.2, %v2387_v8  ;;  %v4531_v6 = vpop.permute.xlu1 %2807 }
 0x2cf   :  { %v2913_v61 = vmul.f32 %v2768_v1, %v2657_v56  ;;  %v2658_v37 = vsel %vm2530_vm10, %v2385_v47, %v2594_v28  ;;  %vm2532_vm12 = vcmp.gt.f32.partialorder %v2389_v52, 0.0  ;;  %v2596_v0 = vmul.f32 0.2, %v2389_v52  ;;  %v2803_v48 = vpop.permute.xlu0 %2802 }
 0x2d0   :  { %v2914_v54 = vmul.f32 %v2768_v1, %v2658_v37  ;;  %v2659_v2 = vsel %vm2531_vm11, %v2387_v8, %v2595_v21 }
 0x2d1   :  { %v2972_v9 = vadd.f32 %v2971_v38, %v2913_v61  ;;  %v2915_v25 = vmul.f32 %v2773_v42, %v2659_v2  ;;  %v2660_v60 = vsel %vm2532_vm12, %v2389_v52, %v2596_v0  ;;  %v2392_v27 = vpop.f32.mrb[0].mxu1 }
 0x2d2   :  { %v3009_v50 = vadd.f32 %v3008_v17, %v2914_v54  ;;  %v2916_v53 = vmul.f32 %v2773_v42, %v2660_v60  ;;  %v3280_v51 = vadd.f32 %v2392_v27, %v4478_v62  ;;  %v2394_v30 = vpop.f32.mrb[1].mxu1 }
 0x2d3   :  { %v2973_v31 = vadd.f32 %v2972_v9, %v2915_v25  ;;  %v3281_v34 = vadd.f32 %v2394_v30, %v4478_v62  ;;  %v2396_v24 = vpop.f32.mrb[2].mxu1  ;;  %v4538_v25 = vpop.permute.xlu1 %2817 }
 0x2d4   :  { %v3010_v33 = vadd.f32 %v3009_v50, %v2916_v53  ;;  %vm2533_vm13 = vcmp.gt.f32.partialorder %v3280_v51, 0.0  ;;  %v2597_v63 = vmul.f32 0.2, %v3280_v51  ;;  %v3282_v3 = vadd.f32 %v2396_v24, %v4476_v22  ;;  %v2398_v1 = vpop.f32.mrb[3].mxu1 }
 0x2d5   :  { %vm2534_vm14 = vcmp.gt.f32.partialorder %v3281_v34, 0.0  ;;  %v2598_v4 = vmul.f32 0.2, %v3281_v34  ;;  %v3283_v29 = vadd.f32 %v2398_v1, %v4476_v22 }
 0x2d6   :  { %v2661_v14 = vsel %vm2533_vm13, %v3280_v51, %v2597_v63  ;;  %vm2535_vm15 = vcmp.gt.f32.partialorder %v3282_v3, 0.0  ;;  %v2599_v57 = vmul.f32 0.2, %v3282_v3  ;;  %v2813_v51 = vpop.permute.xlu0 %2812 }
 0x2d7   :  { %v2917_v39 = vmul.f32 %v4512_v35, %v2661_v14  ;;  %v2662_v62 = vsel %vm2534_vm14, %v3281_v34, %v2598_v4  ;;  %vm2536_vm1 = vcmp.gt.f32.partialorder %v3283_v29, 0.0  ;;  %v2600_v19 = vmul.f32 0.2, %v3283_v29 }
 0x2d8   :  { %v2918_v42 = vmul.f32 %v4512_v35, %v2662_v62  ;;  %v2663_v40 = vsel %vm2535_vm15, %v3282_v3, %v2599_v57 }
 0x2d9   :  { %v2974_v32 = vadd.f32 %v2973_v31, %v2917_v39  ;;  %v2919_v44 = vmul.f32 %v2783_v5, %v2663_v40  ;;  %v2664_v45 = vsel %vm2536_vm1, %v3283_v29, %v2600_v19  ;;  %v2402_v46 = vpop.f32.mrb[4].mxu1  ;;  %v4544_v39 = vpop.permute.xlu1 %2827 }
 0x2da   :  { %v3011_v58 = vadd.f32 %v3010_v33, %v2918_v42  ;;  %v2920_v38 = vmul.f32 %v2783_v5, %v2664_v45  ;;  %v3284_v22 = vadd.f32 %v2402_v46, %v4482_v10  ;;  %v2404_v47 = vpop.f32.mrb[5].mxu1  ;;  %v4547_v42 = vpop.permute.xlu0 %2822 }
 0x2db   :  { %v2975_v17 = vadd.f32 %v2974_v32, %v2919_v44  ;;  %v3285_v59 = vadd.f32 %v2404_v47, %v4482_v10  ;;  %v2406_v8 = vpop.f32.mrb[6].mxu1 }
 0x2dc   :  { %v3012_v28 = vadd.f32 %v3011_v58, %v2920_v38  ;;  %vm2537_vm2 = vcmp.gt.f32.partialorder %v3284_v22, 0.0  ;;  %v2601_v35 = vmul.f32 0.2, %v3284_v22  ;;  %v3286_v52 = vadd.f32 %v2406_v8, %v4480_v41  ;;  %v2408_v56 = vpop.f32.mrb[7].mxu1 }
 0x2dd   :  { %vm2538_vm3 = vcmp.gt.f32.partialorder %v3285_v59, 0.0  ;;  %v2602_v21 = vmul.f32 0.2, %v3285_v59  ;;  %v3287_v61 = vadd.f32 %v2408_v56, %v4480_v41  ;;  %v4553_v56 = vpop.permute.xlu1 %2837 }
 0x2de   :  { %v2665_v37 = vsel %vm2537_vm2, %v3284_v22, %v2601_v35  ;;  %vm2539_vm4 = vcmp.gt.f32.partialorder %v3286_v52, 0.0  ;;  %v2603_v0 = vmul.f32 0.2, %v3286_v52 }
 0x2df   :  { %v2921_v5 = vmul.f32 %v4520_v43, %v2665_v37  ;;  %v2666_v54 = vsel %vm2538_vm3, %v3285_v59, %v2602_v21  ;;  %vm2540_vm5 = vcmp.gt.f32.partialorder %v3287_v61, 0.0  ;;  %v2604_v10 = vmul.f32 0.2, %v3287_v61 }
 0x2e0   :  { %v2922_v2 = vmul.f32 %v4520_v43, %v2666_v54  ;;  %v2667_v9 = vsel %vm2539_vm4, %v3286_v52, %v2603_v0 }
 0x2e1   :  { %v2976_v60 = vadd.f32 %v2975_v17, %v2921_v5  ;;  %v2923_v27 = vmul.f32 %v2793_v36, %v2667_v9  ;;  %v2668_v50 = vsel %vm2540_vm5, %v3287_v61, %v2604_v10  ;;  %v2412_v53 = vpop.f32.mrb[8].mxu1 }
 0x2e2   :  { %v3013_v30 = vadd.f32 %v3012_v28, %v2922_v2  ;;  %v2924_v41 = vmul.f32 %v2793_v36, %v2668_v50  ;;  %v3288_v31 = vadd.f32 %v2412_v53, %v4486_v7  ;;  %v2414_v34 = vpop.f32.mrb[9].mxu1 }
 0x2e3   :  { %v2977_v24 = vadd.f32 %v2976_v60, %v2923_v27  ;;  %v3289_v33 = vadd.f32 %v2414_v34, %v4486_v7  ;;  %v2416_v63 = vpop.f32.mrb[10].mxu1 }
 0x2e4   :  { %v3014_v3 = vadd.f32 %v3013_v30, %v2924_v41  ;;  %vm2541_vm0 = vcmp.gt.f32.partialorder %v3288_v31, 0.0  ;;  %v2605_v43 = vmul.f32 0.2, %v3288_v31  ;;  %v3290_v1 = vadd.f32 %v2416_v63, %v4484_v12  ;;  %v2418_v4 = vpop.f32.mrb[11].mxu1 }
 0x2e5   :  { %vm2542_vm6 = vcmp.gt.f32.partialorder %v3289_v33, 0.0  ;;  %v2606_v29 = vmul.f32 0.2, %v3289_v33  ;;  %v3291_v14 = vadd.f32 %v2418_v4, %v4484_v12 }
 0x2e6   :  { %v2669_v57 = vsel %vm2541_vm0, %v3288_v31, %v2605_v43  ;;  %vm2543_vm7 = vcmp.gt.f32.partialorder %v3290_v1, 0.0  ;;  %v2607_v36 = vmul.f32 0.2, %v3290_v1  ;;  %v4561_v31 = vpop.permute.xlu1 %2842 }
 0x2e7   :  { %v2925_v62 = vmul.f32 %v4525_v49, %v2669_v57  ;;  %v2670_v19 = vsel %vm2542_vm6, %v3289_v33, %v2606_v29  ;;  %vm2544_vm8 = vcmp.gt.f32.partialorder %v3291_v14, 0.0  ;;  %v2608_v7 = vmul.f32 0.2, %v3291_v14 }
 0x2e8   :  { %v2926_v40 = vmul.f32 %v4525_v49, %v2670_v19  ;;  %v2671_v32 = vsel %vm2543_vm7, %v3290_v1, %v2607_v36 }
 0x2e9   :  { %v2978_v44 = vadd.f32 %v2977_v24, %v2925_v62  ;;  %v2927_v45 = vmul.f32 %v2803_v48, %v2671_v32  ;;  %v2672_v46 = vsel %vm2544_vm8, %v3291_v14, %v2608_v7  ;;  %v2422_v58 = vpop.f32.mrb[12].mxu1 }
 0x2ea   :  { %v3015_v12 = vadd.f32 %v3014_v3, %v2926_v40  ;;  %v2928_v38 = vmul.f32 %v2803_v48, %v2672_v46  ;;  %v3292_v22 = vadd.f32 %v2422_v58, %v4490_v16  ;;  %v2424_v47 = vpop.f32.mrb[13].mxu1  ;;  %v4556_v48 = vpop.permute.xlu0 %2832 }
 0x2eb   :  { %v2979_v17 = vadd.f32 %v2978_v44, %v2927_v45  ;;  %v3293_v59 = vadd.f32 %v2424_v47, %v4490_v16  ;;  %v2426_v8 = vpop.f32.mrb[14].mxu1  ;;  %v4570_v7 = vpop.permute.xlu1 %2847 }
 0x2ec   :  { %v3016_v28 = vadd.f32 %v3015_v12, %v2928_v38  ;;  %vm2545_vm9 = vcmp.gt.f32.partialorder %v3292_v22, 0.0  ;;  %v2609_v35 = vmul.f32 0.2, %v3292_v22  ;;  %v3294_v52 = vadd.f32 %v2426_v8, %v4488_v13  ;;  %v2428_v49 = vpop.f32.mrb[15].mxu1 }
 0x2ed   :  { %vm2546_vm10 = vcmp.gt.f32.partialorder %v3293_v59, 0.0  ;;  %v2610_v21 = vmul.f32 0.2, %v3293_v59  ;;  %v3295_v61 = vadd.f32 %v2428_v49, %v4488_v13 }
 0x2ee   :  { %v2673_v37 = vsel %vm2545_vm9, %v3292_v22, %v2609_v35  ;;  %vm2547_vm11 = vcmp.gt.f32.partialorder %v3294_v52, 0.0  ;;  %v2611_v0 = vmul.f32 0.2, %v3294_v52  ;;  %v4564_v63 = vpop.permute.xlu0 %1762 }
 0x2ef   :  { %v2929_v16 = vmul.f32 %v4531_v6, %v2673_v37  ;;  %v2674_v5 = vsel %vm2546_vm10, %v3293_v59, %v2610_v21  ;;  %vm2548_vm12 = vcmp.gt.f32.partialorder %v3295_v61, 0.0  ;;  %v2612_v54 = vmul.f32 0.2, %v3295_v61  ;;  %v4580_v21 = vpop.permute.xlu1 %2852 }
 0x2f0   :  { %v2930_v10 = vmul.f32 %v4531_v6, %v2674_v5  ;;  %v2675_v2 = vsel %vm2547_vm11, %v3294_v52, %v2611_v0 }
 0x2f1   :  { %v2980_v9 = vadd.f32 %v2979_v17, %v2929_v16  ;;  %v2931_v60 = vmul.f32 %v2813_v51, %v2675_v2  ;;  %v2676_v27 = vsel %vm2548_vm12, %v3295_v61, %v2612_v54  ;;  %v2432_v50 = vpop.f32.mrb[16].mxu1 }
 0x2f2   :  { %v3017_v53 = vadd.f32 %v3016_v28, %v2930_v10  ;;  %v2932_v30 = vmul.f32 %v2813_v51, %v2676_v27  ;;  %v3296_v13 = vadd.f32 %v2432_v50, %v4494_v20  ;;  %v2434_v41 = vpop.f32.mrb[17].mxu1  ;;  %v4573_v46 = vpop.permute.xlu0 %1767 }
 0x2f3   :  { %v2981_v34 = vadd.f32 %v2980_v9, %v2931_v60  ;;  %v3297_v24 = vadd.f32 %v2434_v41, %v4494_v20  ;;  %v2436_v33 = vpop.f32.mrb[18].mxu1 }
 0x2f4   :  { %v3018_v3 = vadd.f32 %v3017_v53, %v2932_v30  ;;  %vm2549_vm13 = vcmp.gt.f32.partialorder %v3296_v13, 0.0  ;;  %v2613_v6 = vmul.f32 0.2, %v3296_v13  ;;  %v3298_v43 = vadd.f32 %v2436_v33, %v4492_v18  ;;  %v2438_v1 = vpop.f32.mrb[19].mxu1  ;;  %v4591_v33 = vpop.permute.xlu1 %2857 }
 0x2f5   :  { %vm2550_vm14 = vcmp.gt.f32.partialorder %v3297_v24, 0.0  ;;  %v2614_v4 = vmul.f32 0.2, %v3297_v24  ;;  %v3299_v51 = vadd.f32 %v2438_v1, %v4492_v18 }
 0x2f6   :  { %v2677_v29 = vsel %vm2549_vm13, %v3296_v13, %v2613_v6  ;;  %vm2551_vm15 = vcmp.gt.f32.partialorder %v3298_v43, 0.0  ;;  %v2615_v14 = vmul.f32 0.2, %v3298_v43  ;;  %v4583_v0 = vpop.permute.xlu0 %1772 }
 0x2f7   :  { %v2933_v57 = vmul.f32 %v4538_v25, %v2677_v29  ;;  %v2678_v36 = vsel %vm2550_vm14, %v3297_v24, %v2614_v4  ;;  %vm2552_vm1 = vcmp.gt.f32.partialorder %v3299_v51, 0.0  ;;  %v2616_v20 = vmul.f32 0.2, %v3299_v51 }
 0x2f8   :  { %v2934_v62 = vmul.f32 %v4538_v25, %v2678_v36  ;;  %v2679_v19 = vsel %vm2551_vm15, %v3298_v43, %v2615_v14 }
 0x2f9   :  { %v2982_v40 = vadd.f32 %v2981_v34, %v2933_v57  ;;  %v2935_v32 = vmul.f32 %v4547_v42, %v2679_v19  ;;  %v2680_v44 = vsel %vm2552_vm1, %v3299_v51, %v2616_v20  ;;  %v2442_v45 = vpop.f32.mrb[20].mxu1 }
 0x2fa   :  { %v3019_v18 = vadd.f32 %v3018_v3, %v2934_v62  ;;  %v2936_v58 = vmul.f32 %v4547_v42, %v2680_v44  ;;  %v3300_v12 = vadd.f32 %v2442_v45, %v4498_v55  ;;  %v2444_v38 = vpop.f32.mrb[21].mxu1  ;;  %v2863_v44 = vpop.permute.xlu1 %2862 }
 0x2fb   :  { %v2983_v22 = vadd.f32 %v2982_v40, %v2935_v32  ;;  %v3301_v47 = vadd.f32 %v2444_v38, %v4498_v55  ;;  %v2446_v25 = vpop.f32.mrb[22].mxu1 }
 0x2fc   :  { %v3020_v17 = vadd.f32 %v3019_v18, %v2936_v58  ;;  %vm2553_vm2 = vcmp.gt.f32.partialorder %v3300_v12, 0.0  ;;  %v2617_v59 = vmul.f32 0.2, %v3300_v12  ;;  %v3302_v8 = vadd.f32 %v2446_v25, %v4496_v26  ;;  %v2448_v28 = vpop.f32.mrb[23].mxu1 }
 0x2fd   :  { %vm2554_vm3 = vcmp.gt.f32.partialorder %v3301_v47, 0.0  ;;  %v2618_v35 = vmul.f32 0.2, %v3301_v47  ;;  %v3303_v52 = vadd.f32 %v2448_v28, %v4496_v26 }
 0x2fe   :  { %v2681_v49 = vsel %vm2553_vm2, %v3300_v12, %v2617_v59  ;;  %vm2555_vm4 = vcmp.gt.f32.partialorder %v3302_v8, 0.0  ;;  %v2619_v42 = vmul.f32 0.2, %v3302_v8 }
 0x2ff   :  { %v2937_v61 = vmul.f32 %v4544_v39, %v2681_v49  ;;  %v2682_v37 = vsel %vm2554_vm3, %v3301_v47, %v2618_v35  ;;  %vm2556_vm5 = vcmp.gt.f32.partialorder %v3303_v52, 0.0  ;;  %v2620_v55 = vmul.f32 0.2, %v3303_v52  ;;  %v2868_v49 = vpop.permute.xlu1 %2867 }
 0x300   :  { %v2938_v16 = vmul.f32 %v4544_v39, %v2682_v37  ;;  %v2683_v5 = vsel %vm2555_vm4, %v3302_v8, %v2619_v42 }
 0x301   :  { %v2984_v54 = vadd.f32 %v2983_v22, %v2937_v61  ;;  %v2939_v10 = vmul.f32 %v4556_v48, %v2683_v5  ;;  %v2684_v2 = vsel %vm2556_vm5, %v3303_v52, %v2620_v55  ;;  %v2452_v26 = vpop.f32.mrb[24].mxu1 }
 0x302   :  { %v3021_v9 = vadd.f32 %v3020_v17, %v2938_v16  ;;  %v2940_v60 = vmul.f32 %v4556_v48, %v2684_v2  ;;  %v3304_v27 = vadd.f32 %v2452_v26, %v4502_v11  ;;  %v2454_v50 = vpop.f32.mrb[25].mxu1  ;;  %v4594_v48 = vpop.permute.xlu0 %1777 }
 0x303   :  { %v2985_v53 = vadd.f32 %v2984_v54, %v2939_v10  ;;  %v3305_v30 = vadd.f32 %v2454_v50, %v4502_v11  ;;  %v2456_v13 = vpop.f32.mrb[26].mxu1 }
 0x304   :  { %v3022_v41 = vadd.f32 %v3021_v9, %v2940_v60  ;;  %vm2557_vm0 = vcmp.gt.f32.partialorder %v3304_v27, 0.0  ;;  %v2621_v34 = vmul.f32 0.2, %v3304_v27  ;;  %v3306_v39 = vadd.f32 %v2456_v13, %v4500_v23  ;;  %v2458_v24 = vpop.f32.mrb[27].mxu1 }
 0x305   :  { %vm2558_vm6 = vcmp.gt.f32.partialorder %v3305_v30, 0.0  ;;  %v2622_v3 = vmul.f32 0.2, %v3305_v30  ;;  %v3307_v6 = vadd.f32 %v2458_v24, %v4500_v23 }
 0x306   :  { %v2685_v43 = vsel %vm2557_vm0, %v3304_v27, %v2621_v34  ;;  %vm2559_vm7 = vcmp.gt.f32.partialorder %v3306_v39, 0.0  ;;  %v2623_v1 = vmul.f32 0.2, %v3306_v39  ;;  %v4602_v12 = vpop.permute.xlu0 %1782 }
 0x307   :  { %v2941_v11 = vmul.f32 %v4553_v56, %v2685_v43  ;;  %v2686_v4 = vsel %vm2558_vm6, %v3305_v30, %v2622_v3  ;;  %vm2560_vm8 = vcmp.gt.f32.partialorder %v3307_v6, 0.0  ;;  %v2624_v51 = vmul.f32 0.2, %v3307_v6 }
 0x308   :  { %v2942_v29 = vmul.f32 %v4553_v56, %v2686_v4  ;;  %v2687_v14 = vsel %vm2559_vm7, %v3306_v39, %v2623_v1 }
 0x309   :  { %v2986_v57 = vadd.f32 %v2985_v53, %v2941_v11  ;;  %v2943_v36 = vmul.f32 %v4561_v31, %v2687_v14  ;;  %v2688_v20 = vsel %vm2560_vm8, %v3307_v6, %v2624_v51  ;;  %v2462_v62 = vpop.f32.mrb[28].mxu1 }
 0x30a   :  { %v3023_v19 = vadd.f32 %v3022_v41, %v2942_v29  ;;  %v2944_v23 = vmul.f32 %v4561_v31, %v2688_v20  ;;  %v3308_v40 = vadd.f32 %v2462_v62, %v4504_v15  ;;  %v2464_v32 = vpop.f32.mrb[29].mxu1  ;;  %v4609_v16 = vpop.permute.xlu0 %1787 }
 0x30b   :  { %v2987_v45 = vadd.f32 %v2986_v57, %v2943_v36  ;;  %v3309_v18 = vadd.f32 %v2464_v32, %v4504_v15  ;;  %v2466_v58 = vpop.f32.mrb[30].mxu1  ;;  %v2873_v41 = vpop.permute.xlu1 %2872 }
 0x30c   :  { %v3024_v56 = vadd.f32 %v3023_v19, %v2944_v23  ;;  %vm2561_vm9 = vcmp.gt.f32.partialorder %v3308_v40, 0.0  ;;  %v2625_v38 = vmul.f32 0.2, %v3308_v40  ;;  %v3310_v22 = vadd.f32 %v2466_v58, %v4564_v63  ;;  %v2468_v47 = vpop.f32.mrb[31].mxu1 }
 0x30d   :  { %vm2562_vm10 = vcmp.gt.f32.partialorder %v3309_v18, 0.0  ;;  %v2626_v25 = vmul.f32 0.2, %v3309_v18  ;;  %v3311_v31 = vadd.f32 %v2468_v47, %v4564_v63 }
 0x30e   :  { %v2689_v17 = vsel %vm2561_vm9, %v3308_v40, %v2625_v38  ;;  %vm2563_vm11 = vcmp.gt.f32.partialorder %v3310_v22, 0.0  ;;  %v2627_v59 = vmul.f32 0.2, %v3310_v22  ;;  %v1793_v24 = vpop.permute.xlu0 %1792 }
 0x30f   :  { %v2945_v8 = vmul.f32 %v4570_v7, %v2689_v17  ;;  %v2690_v28 = vsel %vm2562_vm10, %v3309_v18, %v2626_v25  ;;  %vm2564_vm12 = vcmp.gt.f32.partialorder %v3311_v31, 0.0  ;;  %v2628_v15 = vmul.f32 0.2, %v3311_v31  ;;  %v2878_v40 = vpop.permute.xlu1 %2877 }
 0x310   :  { %v2946_v35 = vmul.f32 %v4570_v7, %v2690_v28  ;;  %v2691_v52 = vsel %vm2563_vm11, %v3310_v22, %v2627_v59 }
 0x311   :  { %v2988_v42 = vadd.f32 %v2987_v45, %v2945_v8  ;;  %v2947_v61 = vmul.f32 %v4580_v21, %v2691_v52  ;;  %v2692_v37 = vsel %vm2564_vm12, %v3311_v31, %v2628_v15  ;;  %v2472_v55 = vpop.f32.mrb[32].mxu1 }
 0x312   :  { %v3025_v63 = vadd.f32 %v3024_v56, %v2946_v35  ;;  %v2948_v5 = vmul.f32 %v4580_v21, %v2692_v37  ;;  %v3312_v54 = vadd.f32 %v2472_v55, %v4573_v46  ;;  %v2474_v10 = vpop.f32.mrb[33].mxu1  ;;  %v1798_v18 = vpop.permute.xlu0 %1797 }
 0x313   :  { %v2989_v2 = vadd.f32 %v2988_v42, %v2947_v61  ;;  %v3313_v26 = vadd.f32 %v2474_v10, %v4573_v46  ;;  %v2476_v9 = vpop.f32.mrb[34].mxu1 }
 0x314   :  { %v3026_v7 = vadd.f32 %v3025_v63, %v2948_v5  ;;  %vm2565_vm13 = vcmp.gt.f32.partialorder %v3312_v54, 0.0  ;;  %v2629_v60 = vmul.f32 0.2, %v3312_v54  ;;  %v3314_v27 = vadd.f32 %v2476_v9, %v4583_v0  ;;  %v2478_v50 = vpop.f32.mrb[35].mxu1 }
 0x315   :  { %vm2566_vm14 = vcmp.gt.f32.partialorder %v3313_v26, 0.0  ;;  %v2630_v53 = vmul.f32 0.2, %v3313_v26  ;;  %v3315_v30 = vadd.f32 %v2478_v50, %v4583_v0 }
 0x316   :  { %v2693_v13 = vsel %vm2565_vm13, %v3312_v54, %v2629_v60  ;;  %vm2567_vm15 = vcmp.gt.f32.partialorder %v3314_v27, 0.0  ;;  %v2631_v21 = vmul.f32 0.2, %v3314_v27  ;;  %v1803_v37 = vpop.permute.xlu0 %1802 }
 0x317   :  { %v2949_v34 = vmul.f32 %v4591_v33, %v2693_v13  ;;  %v2694_v39 = vsel %vm2566_vm14, %v3313_v26, %v2630_v53  ;;  %vm2568_vm1 = vcmp.gt.f32.partialorder %v3315_v30, 0.0  ;;  %v2632_v46 = vmul.f32 0.2, %v3315_v30 }
 0x318   :  { %v2950_v3 = vmul.f32 %v4591_v33, %v2694_v39  ;;  %v2695_v6 = vsel %vm2567_vm15, %v3314_v27, %v2631_v21 }
 0x319   :  { %v2990_v43 = vadd.f32 %v2989_v2, %v2949_v34  ;;  %v2951_v1 = vmul.f32 %v2863_v44, %v2695_v6  ;;  %v2696_v11 = vsel %vm2568_vm1, %v3315_v30, %v2632_v46  ;;  %v2482_v4 = vpop.f32.mrb[36].mxu1 }
 0x31a   :  { %v3027_v51 = vadd.f32 %v3026_v7, %v2950_v3  ;;  %v2952_v29 = vmul.f32 %v2863_v44, %v2696_v11  ;;  %v3316_v0 = vadd.f32 %v2482_v4, %v4594_v48  ;;  %v2484_v14 = vpop.f32.mrb[37].mxu1 }
 0x31b   :  { %v2991_v57 = vadd.f32 %v2990_v43, %v2951_v1  ;;  %v3317_v36 = vadd.f32 %v2484_v14, %v4594_v48  ;;  %v2486_v20 = vpop.f32.mrb[38].mxu1 }
 0x31c   :  { %v3028_v62 = vadd.f32 %v3027_v51, %v2952_v29  ;;  %vm2569_vm2 = vcmp.gt.f32.partialorder %v3316_v0, 0.0  ;;  %v2633_v19 = vmul.f32 0.2, %v3316_v0  ;;  %v3318_v23 = vadd.f32 %v2486_v20, %v4602_v12  ;;  %v2488_v33 = vpop.f32.mrb[39].mxu1 }
 0x31d   :  { %vm2570_vm3 = vcmp.gt.f32.partialorder %v3317_v36, 0.0  ;;  %v2634_v32 = vmul.f32 0.2, %v3317_v36  ;;  %v3319_v45 = vadd.f32 %v2488_v33, %v4602_v12  ;;  %v2883_v12 = vpop.permute.xlu1 %2882 }
 0x31e   :  { %v2697_v44 = vsel %vm2569_vm2, %v3316_v0, %v2633_v19  ;;  %vm2571_vm4 = vcmp.gt.f32.partialorder %v3318_v23, 0.0  ;;  %v2635_v58 = vmul.f32 0.2, %v3318_v23 }
 0x31f   :  { %v2953_v56 = vmul.f32 %v2868_v49, %v2697_v44  ;;  %v2698_v38 = vsel %vm2570_vm3, %v3317_v36, %v2634_v32  ;;  %vm2572_vm5 = vcmp.gt.f32.partialorder %v3319_v45, 0.0  ;;  %v2636_v48 = vmul.f32 0.2, %v3319_v45 }
 0x320   :  { %v2954_v22 = vmul.f32 %v2868_v49, %v2698_v38  ;;  %v2699_v47 = vsel %vm2571_vm4, %v3318_v23, %v2635_v58 }
 0x321   :  { %v2992_v25 = vadd.f32 %v2991_v57, %v2953_v56  ;;  %v2955_v31 = vmul.f32 %v2873_v41, %v2699_v47  ;;  %v2700_v17 = vsel %vm2572_vm5, %v3319_v45, %v2636_v48  ;;  %v2492_v59 = vpop.f32.mrb[40].mxu1 }
 0x322   :  { %v3029_v8 = vadd.f32 %v3028_v62, %v2954_v22  ;;  %v2956_v28 = vmul.f32 %v2873_v41, %v2700_v17  ;;  %v3320_v15 = vadd.f32 %v2492_v59, %v4609_v16  ;;  %v2494_v35 = vpop.f32.mrb[41].mxu1  ;;  %v1808_v41 = vpop.permute.xlu0 %1807 }
 0x323   :  { %v2993_v52 = vadd.f32 %v2992_v25, %v2955_v31  ;;  %v3321_v42 = vadd.f32 %v2494_v35, %v4609_v16  ;;  %v2496_v61 = vpop.f32.mrb[42].mxu1  ;;  %v2888_v16 = vpop.permute.xlu1 %2887 }
 0x324   :  { %v3030_v55 = vadd.f32 %v3029_v8, %v2956_v28  ;;  %vm2573_vm0 = vcmp.gt.f32.partialorder %v3320_v15, 0.0  ;;  %v2637_v63 = vmul.f32 0.2, %v3320_v15  ;;  %v3322_v49 = vadd.f32 %v2496_v61, %v1793_v24  ;;  %v2498_v5 = vpop.f32.mrb[43].mxu1 }
 0x325   :  { %vm2574_vm6 = vcmp.gt.f32.partialorder %v3321_v42, 0.0  ;;  %v2638_v54 = vmul.f32 0.2, %v3321_v42  ;;  %v3323_v10 = vadd.f32 %v2498_v5, %v1793_v24 }
 0x326   :  { %v2701_v2 = vsel %vm2573_vm0, %v3320_v15, %v2637_v63  ;;  %vm2575_vm7 = vcmp.gt.f32.partialorder %v3322_v49, 0.0  ;;  %v2639_v26 = vmul.f32 0.2, %v3322_v49  ;;  %v1813_v23 = vpop.permute.xlu0 %1812 }
 0x327   :  { %v2957_v9 = vmul.f32 %v2878_v40, %v2701_v2  ;;  %v2702_v7 = vsel %vm2574_vm6, %v3321_v42, %v2638_v54  ;;  %vm2576_vm8 = vcmp.gt.f32.partialorder %v3323_v10, 0.0  ;;  %v2640_v60 = vmul.f32 0.2, %v3323_v10  ;;  %v2893_v19 = vpop.permute.xlu1 %2892 }
 0x328   :  { %v2958_v27 = vmul.f32 %v2878_v40, %v2702_v7  ;;  %v2703_v50 = vsel %vm2575_vm7, %v3322_v49, %v2639_v26 }
 0x329   :  { %v2994_v53 = vadd.f32 %v2993_v52, %v2957_v9  ;;  %v2959_v30 = vmul.f32 %v2883_v12, %v2703_v50  ;;  %v2704_v13 = vsel %vm2576_vm8, %v3323_v10, %v2640_v60  ;;  %v2502_v21 = vpop.f32.mrb[44].mxu1  ;;  %v3049_v9 = vlaneseq }
 0x32a   :  { %v3031_v34 = vadd.f32 %v3030_v55, %v2958_v27  ;;  %v2960_v39 = vmul.f32 %v2883_v12, %v2704_v13  ;;  %v3324_v46 = vadd.f32 %v2502_v21, %v1798_v18  ;;  %v2504_v3 = vpop.f32.mrb[45].mxu1  ;;  %v2898_v35 = vpop.permute.xlu0 %2897 }
 0x32b   :  { %v2995_v24 = vadd.f32 %v2994_v53, %v2959_v30  ;;  %v3325_v6 = vadd.f32 %v2504_v3, %v1798_v18  ;;  %v2506_v43 = vpop.f32.mrb[46].mxu1  ;;  %v2903_v55 = vpop.permute.xlu1 %2902  ;;  %vm3085_vm2 = vcmp.lt.s32.totalorder %v3049_v9, 256 }
 0x32c   :  { %v3032_v1 = vadd.f32 %v3031_v34, %v2960_v39  ;;  %vm2577_vm9 = vcmp.gt.f32.partialorder %v3324_v46, 0.0  ;;  %v2641_v11 = vmul.f32 0.2, %v3324_v46  ;;  %v3326_v4 = vadd.f32 %v2506_v43, %v1803_v37  ;;  %v2508_v51 = vpop.f32.mrb[47].mxu1 }
 0x32d   :  { %vm2578_vm10 = vcmp.gt.f32.partialorder %v3325_v6, 0.0  ;;  %v2642_v29 = vmul.f32 0.2, %v3325_v6  ;;  %v3327_v0 = vadd.f32 %v2508_v51, %v1803_v37 }
 0x32e   :  { %v2705_v14 = vsel %vm2577_vm9, %v3324_v46, %v2641_v11  ;;  %vm2579_vm11 = vcmp.gt.f32.partialorder %v3326_v4, 0.0  ;;  %v2643_v57 = vmul.f32 0.2, %v3326_v4  ;;  %v3047_v39 = vpop.permute.xlu0 %3046 }
 0x32f   :  { %v2961_v36 = vmul.f32 %v2888_v16, %v2705_v14  ;;  %v2706_v20 = vsel %vm2578_vm10, %v3325_v6, %v2642_v29  ;;  %vm2580_vm12 = vcmp.gt.f32.partialorder %v3327_v0, 0.0  ;;  %v2644_v62 = vmul.f32 0.2, %v3327_v0 }
 0x330   :  { %v2962_v33 = vmul.f32 %v2888_v16, %v2706_v20  ;;  %v2707_v40 = vsel %vm2579_vm11, %v3326_v4, %v2643_v57  ;;  %v3050_v16 = vshrl.u32 %v3049_v9, 7 }
 0x331   :  { %v2996_v32 = vadd.f32 %v2995_v24, %v2961_v36  ;;  %v2963_v45 = vmul.f32 %v2893_v19, %v2707_v40  ;;  %v2708_v18 = vsel %vm2580_vm12, %v3327_v0, %v2644_v62  ;;  %v2512_v44 = vpop.f32.mrb[48].mxu1 }
 0x332   :  { %v3033_v58 = vadd.f32 %v3032_v1, %v2962_v33  ;;  %v2964_v56 = vmul.f32 %v2893_v19, %v2708_v18  ;;  %v3328_v38 = vadd.f32 %v2512_v44, %v1808_v41  ;;  %v2514_v48 = vpop.f32.mrb[49].mxu1  ;;  %v3531_v19 = vmov 1966171168  }
 0x333   :  { %v2997_v22 = vadd.f32 %v2996_v32, %v2963_v45  ;;  %v3329_v47 = vadd.f32 %v2514_v48, %v1808_v41  ;;  %v2516_v25 = vpop.f32.mrb[50].mxu1  ;;  %v3051_v41 = vsub.s32 0, %v3050_v16 }
 0x334   :  { %v3034_v31 = vadd.f32 %v3033_v58, %v2964_v56  ;;  %vm2581_vm13 = vcmp.gt.f32.partialorder %v3328_v38, 0.0  ;;  %v2645_v17 = vmul.f32 0.2, %v3328_v38  ;;  %v3330_v59 = vadd.f32 %v2516_v25, %v1813_v23  ;;  %v2518_v8 = vpop.f32.mrb[51].mxu1 }
 0x335   :  { %vm2582_vm14 = vcmp.gt.f32.partialorder %v3329_v47, 0.0  ;;  %v2646_v28 = vmul.f32 0.2, %v3329_v47  ;;  %v3331_v15 = vadd.f32 %v2518_v8, %v1813_v23  ;;  %v3052_v6 = vrot.slane %v3047_v39, %v3051_v41 }
 0x336   :  { %v2709_v12 = vsel %vm2581_vm13, %v3328_v38, %v2645_v17  ;;  %vm2583_vm15 = vcmp.gt.f32.partialorder %v3330_v59, 0.0  ;;  %v2647_v52 = vmul.f32 0.2, %v3330_v59  ;;  %v3069_v23 = vunpack.c.l.s4 %v3531_v19 }
 0x337   :  { %v2965_v42 = vmul.f32 %v2898_v35, %v2709_v12  ;;  %v2710_v61 = vsel %vm2582_vm14, %v3329_v47, %v2646_v28  ;;  %vm2584_vm1 = vcmp.gt.f32.partialorder %v3331_v15, 0.0  ;;  %v2648_v37 = vmul.f32 0.2, %v3331_v15 }
 0x338   :  { %v2966_v63 = vmul.f32 %v2898_v35, %v2710_v61  ;;  %v2711_v49 = vsel %vm2583_vm15, %v3330_v59, %v2647_v52  ;;  %v3070_v33 = vunpack.c.0.s8 %v3069_v23 }
 0x339   :  { %v2998_v5 = vadd.f32 %v2997_v22, %v2965_v42  ;;  %v2967_v54 = vmul.f32 %v2903_v55, %v2711_v49  ;;  %v2712_v10 = vsel %vm2584_vm1, %v3331_v15, %v2648_v37 }
 0x33a   :  { %v3035_v2 = vadd.f32 %v3034_v31, %v2966_v63  ;;  %v2968_v26 = vmul.f32 %v2903_v55, %v2712_v10  ;;  %v3073_v32 = vsub.s32 %v3070_v33, %v3050_v16 }
 0x33b   :  { %v2999_v7 = vadd.f32 %v2998_v5, %v2967_v54 }
 0x33c   :  { %v3036_v60 = vadd.f32 %v3035_v2, %v2968_v26 }
 0x33d   :  { %v3000_v27 = vrot.slane %v2999_v7, 4 }
 0x33e   :  { %v3037_v50 = vrot.slane %v3036_v60, 4 }
 0x33f   :  { %v3001_v53 = vadd.f32 %v3000_v27, %v2999_v7 }
 0x340   :  { %v3038_v30 = vadd.f32 %v3037_v50, %v3036_v60 }
 0x341   :  { %v3002_v13 = vrot.slane %v3001_v53, 2 }
 0x342   :  { %v3039_v21 = vrot.slane %v3038_v30, 2 }
 0x343   :  { %v3003_v34 = vadd.f32 %v3002_v13, %v3001_v53 }
 0x344   :  { %v3040_v46 = vadd.f32 %v3039_v21, %v3038_v30 }
 0x345   :  { %v3004_v3 = vrot.slane %v3003_v34, 1 }
 0x346   :  { %v3041_v24 = vrot.slane %v3040_v46, 1 }
 0x347   :  { %v3005_v43 = vadd.f32 %v3004_v3, %v3003_v34 }
 0x348   :  { %v3042_v1 = vadd.f32 %v3041_v24, %v3040_v46 }
 0x349   :  { %v3053_v11 = vadd.f32 %v3052_v6, %v3005_v43 }
 0x34a   :  { %v3054_v4 = vadd.f32 %v3052_v6, %v3042_v1 }
 0x34b   :  { %v3055_v51 = vsub.f32 0.0, %v3053_v11 }
 0x34c   :  { %v3056_v29 = vsub.f32 0.0, %v3054_v4 }
 0x34d   :  { %v3057_v0 = vmul.f32 1.442695, %v3055_v51 }
 0x34e   :  { %v3059_v14 = vmul.f32 1.442695, %v3056_v29 }
 0x34f   :  { %3522 = vpow2.f32 %v3057_v0 }
 0x350   :  { %3524 = vpow2.f32 %v3059_v14 }
 0x359   :  { %v3523_v57 = vpop.eup %3522 }
 0x35a   :  { %v3525_v36 = vpop.eup %3524  ;;  %v3061_v20 = vadd.f32 1.0, %v3523_v57 }
 0x35b   :  { %v3062_v62 = vadd.f32 1.0, %v3525_v36 }
 0x35c   :  { %3526 = vrcp.f32 %v3061_v20 }
 0x35d   :  { %3528 = vrcp.f32 %v3062_v62 }
 0x366   :  { %v3527_v40 = vpop.eup %3526 }
 0x367   :  { %v3529_v45 = vpop.eup %3528 }
 0x368   :  { %v3067_v18 = vcombine.low %v3527_v40, %v3529_v45 }
 0x36a   :  { %v3074_v44 = vrot.slane %v3067_v18, %v3073_v32 }
 0x36c   :  { %v3081_v58 = vrot.slane %v3074_v44, %v3073_v32 }
 0x36e   :  { %3087 = vst.msk [vmem:[%s4634_s7] sm:$0x3] %vm3085_vm2, %v3081_v58 }

</bundles_post_ra>
